<compile_context>
chip_gen: v5e
topology: v5e:2x2
jax: 0.10.0
libtpu: 0.0.40
codegen_flags: <defaults>
</compile_context>

<pallas_src>
import functools
import math

import jax
import jax.numpy as jnp
from jax.experimental import pallas as pl
from jax.experimental.pallas import tpu as pltpu


def _dml_loss_kernel(logits_ref, means_ref, scales_ref, y_ref, out_ref, *,
                     num_classes, log_scale_min):
    # Block shapes (time split as T = 8 * T8; sublanes carry 8 time groups,
    # lanes carry lane_tile positions -> fully dense vregs):
    #   logits/means/scales : (1, 1, nr_mix, 8, lane_tile)
    #   y                   : (1, 1, 8, lane_tile)
    #   out                 : (1, 1, 8, lane_tile)
    logit_probs = logits_ref[0, 0].astype(jnp.float32)            # (nr_mix, 8, L)
    means = means_ref[0, 0].astype(jnp.float32)                   # (nr_mix, 8, L)
    log_scales = jnp.maximum(scales_ref[0, 0].astype(jnp.float32),
                             log_scale_min)                       # (nr_mix, 8, L)
    y = y_ref[0].astype(jnp.float32)                              # (1, 8, L), broadcasts

    half_bin = 1.0 / (num_classes - 1)
    centered = y - means
    inv_stdv = jnp.exp(-log_scales)

    plus_in = inv_stdv * (centered + half_bin)
    min_in = inv_stdv * (centered - half_bin)
    mid_in = inv_stdv * centered

    # Share one exp(-|x|) between sigmoid(x) and softplus(x) (cuts EUP ops).
    def sig_and_softplus(x):
        e = jnp.exp(-jnp.abs(x))
        softplus = jnp.maximum(x, 0.0) + jnp.log1p(e)
        r = 1.0 / (1.0 + e)
        sig = jnp.where(x >= 0.0, r, e * r)   # stable sigmoid
        return sig, softplus

    cdf_plus, sp_plus = sig_and_softplus(plus_in)
    cdf_min, sp_min = sig_and_softplus(min_in)

    log_cdf_plus = plus_in - sp_plus              # log sigmoid(plus_in)
    log_one_minus_cdf_min = -sp_min               # log(1 - sigmoid(min_in))

    cdf_delta = cdf_plus - cdf_min
    sp_mid = jnp.maximum(mid_in, 0.0) + jnp.log1p(jnp.exp(-jnp.abs(mid_in)))
    log_pdf_mid = mid_in - log_scales - 2.0 * sp_mid

    inner_inner = jnp.where(
        cdf_delta > 1e-5,
        jnp.log(jnp.maximum(cdf_delta, 1e-12)),
        log_pdf_mid - math.log((num_classes - 1) / 2.0))
    inner = jnp.where(y > 0.999, log_one_minus_cdf_min, inner_inner)
    log_probs = jnp.where(y < -0.999, log_cdf_plus, inner)       # (nr_mix, 8, L)

    # Fold log_softmax(logits) into the final logsumexp over the mixture axis
    # (axis 0 -> pure elementwise cross-vreg ops, no XLU):
    #   loss = lse(logits) - lse(log_probs + logits)
    def lse_mix(x):
        m = jnp.max(x, axis=0, keepdims=True)
        return m + jnp.log(jnp.sum(jnp.exp(x - m), axis=0, keepdims=True))

    lse_logits = lse_mix(logit_probs)                             # (1, 8, L)
    lse_total = lse_mix(log_probs + logit_probs)                  # (1, 8, L)
    out_ref[0] = lse_logits - lse_total                           # per-sample NLL


def discretized_mix_logistic_loss_mean(y_hat, y, *, num_classes=256,
                                       log_scale_min=-7.0, tile_t=8192):
    """y_hat: (B, 3*nr_mix, T) float; y: (B, T, 1) float. Returns scalar mean NLL."""
    B, C, T = y_hat.shape
    assert C % 3 == 0
    nr_mix = C // 3
    assert y.shape == (B, T, 1)

    # Pad T to a multiple of 8 only when necessary; the common multiple-of-8
    # case is pure metadata reshaping (no HBM copy) in the native dtype.
    T_pad = -(-T // 8) * 8
    y2 = y.reshape(B, T)
    if T_pad != T:
        y_hat = jnp.pad(y_hat, ((0, 0), (0, 0), (0, T_pad - T)))
        y2 = jnp.pad(y2, ((0, 0), (0, T_pad - T)))
    T8 = T_pad // 8

    # Free metadata reshapes: split channels into the three parameter groups
    # and split time as (8, T8) so time occupies both sublanes and lanes.
    yh = y_hat.reshape(B, 3, nr_mix, 8, T8)
    yt = y2.reshape(B, 1, 8, T8)

    # Lane tile: tile_t time steps == tile_t // 8 lanes; multiple of 128 or
    # the full extent.  VMEM per block is small even at 1024 lanes.
    lane_target = max(128, (tile_t // 8 // 128) * 128)
    lane_tile = T8 if T8 <= lane_target else lane_target
    num_t = pl.cdiv(T8, lane_tile)
    # Guarantee >= 2 grid points (when the problem allows) so both v7x
    # TensorCores get work; both axes stay "parallel".
    if B * num_t < 2 and T8 > 128:
        lane_tile = -(-pl.cdiv(T8, 2) // 128) * 128
        num_t = pl.cdiv(T8, lane_tile)
    grid = (B, num_t)

    kernel = functools.partial(_dml_loss_kernel, num_classes=num_classes,
                               log_scale_min=log_scale_min)

    def group_spec(g):
        return pl.BlockSpec((1, 1, nr_mix, 8, lane_tile),
                            lambda b, t, g=g: (b, g, 0, 0, t))

    losses = pl.pallas_call(
        kernel,
        out_shape=jax.ShapeDtypeStruct((B, 1, 8, T8), jnp.float32),
        grid_spec=pltpu.PrefetchScalarGridSpec(
            num_scalar_prefetch=0,
            grid=grid,
            in_specs=[
                group_spec(0),                                       # logit_probs
                group_spec(1),                                       # means
                group_spec(2),                                       # log_scales
                pl.BlockSpec((1, 1, 8, lane_tile),
                             lambda b, t: (b, 0, 0, t)),             # target y
            ],
            out_specs=pl.BlockSpec((1, 1, 8, lane_tile),
                                   lambda b, t: (b, 0, 0, t)),
        ),
        compiler_params=pltpu.CompilerParams(
            dimension_semantics=("parallel", "parallel")),
    )(yh, yh, yh, yt)

    # Row-major flatten undoes the (8, T8) split: flat index == time index.
    # Drop the padded tail (if any), then one tiny exact mean, matching
    # losses.mean() of the PyTorch module.  Ragged-lane-tile garbage never
    # lands in-bounds (Pallas drops OOB writes).
    return jnp.mean(losses.reshape(B, T_pad)[:, :T])


def _reference_loss(y_hat, y, *, num_classes=256, log_scale_min=-7.0):
    """Pure-JAX reference mirroring the PyTorch implementation (reduce=False, then mean)."""
    B, C, T = y_hat.shape
    nr_mix = C // 3
    yh = jnp.transpose(y_hat.astype(jnp.float32), (0, 2, 1))
    logit_probs = yh[:, :, :nr_mix]
    means = yh[:, :, nr_mix:2 * nr_mix]
    log_scales = jnp.maximum(yh[:, :, 2 * nr_mix:], log_scale_min)
    yb = jnp.broadcast_to(y.astype(jnp.float32), means.shape)
    centered = yb - means
    inv_stdv = jnp.exp(-log_scales)
    plus_in = inv_stdv * (centered + 1.0 / (num_classes - 1))
    min_in = inv_stdv * (centered - 1.0 / (num_classes - 1))
    cdf_plus = jax.nn.sigmoid(plus_in)
    cdf_min = jax.nn.sigmoid(min_in)
    log_cdf_plus = plus_in - jax.nn.softplus(plus_in)
    log_one_minus_cdf_min = -jax.nn.softplus(min_in)
    cdf_delta = cdf_plus - cdf_min
    mid_in = inv_stdv * centered
    log_pdf_mid = mid_in - log_scales - 2.0 * jax.nn.softplus(mid_in)
    inner_inner = jnp.where(cdf_delta > 1e-5,
                            jnp.log(jnp.maximum(cdf_delta, 1e-12)),
                            log_pdf_mid - jnp.log((num_classes - 1) / 2.0))
    inner = jnp.where(yb > 0.999, log_one_minus_cdf_min, inner_inner)
    log_probs = jnp.where(yb < -0.999, log_cdf_plus, inner)
    log_probs = log_probs + jax.nn.log_softmax(logit_probs, axis=-1)
    losses = -jax.nn.logsumexp(log_probs, axis=-1, keepdims=True)  # (B, T, 1)
    return jnp.mean(losses)


if __name__ == "__main__":
    # Shapes consistent with the module:
    #   y_hat: (B, 3*nr_mix, T) — WaveNet output, channels-first
    #   y:     (B, T, 1)        — target waveform samples in [-1, 1]
    B, nr_mix = 2, 10
    num_classes = 256                       # config.model.quantize_channels

    key = jax.random.PRNGKey(0)
    k1, k2, k3, k4 = jax.random.split(key, 4)

    # Test 1: T a multiple of 8 (pure metadata reshapes, single dense tile).
    T = 1024
    y_hat = jax.random.normal(k1, (B, 3 * nr_mix, T), dtype=jnp.float32)
    y = jax.random.uniform(k2, (B, T, 1), dtype=jnp.float32,
                           minval=-1.0, maxval=1.0)
    loss = jax.block_until_ready(
        discretized_mix_logistic_loss_mean(
            y_hat, y, num_classes=num_classes, log_scale_min=-7.0))
    ref = jax.block_until_ready(
        _reference_loss(y_hat, y, num_classes=num_classes, log_scale_min=-7.0))
    assert jnp.allclose(loss, ref, rtol=1e-4, atol=1e-4), (loss, ref)

    # Test 2: T not a multiple of 8 and not a multiple of the lane tile
    # (exercises the pad path and the ragged last lane tile).
    T2 = 1603
    y_hat2 = jax.random.normal(k3, (B, 3 * nr_mix, T2), dtype=jnp.float32)
    y2 = jax.random.uniform(k4, (B, T2, 1), dtype=jnp.float32,
                            minval=-1.0, maxval=1.0)
    loss2 = jax.block_until_ready(
        discretized_mix_logistic_loss_mean(
            y_hat2, y2, num_classes=num_classes, log_scale_min=-7.0,
            tile_t=1024))
    ref2 = jax.block_until_ready(
        _reference_loss(y_hat2, y2, num_classes=num_classes,
                        log_scale_min=-7.0))
    assert jnp.allclose(loss2, ref2, rtol=1e-4, atol=1e-4), (loss2, ref2)

    print("KERNEL_OK")
</pallas_src>

<mosaic_0001>
module attributes {stable_mosaic.version = 11 : i64} {
  func.func @_dml_loss_kernel(%arg0: i32, %arg1: i32, %arg2: memref<1x1x10x8x128xf32, #tpu.memory_space<vmem>>, %arg3: memref<1x1x10x8x128xf32, #tpu.memory_space<vmem>>, %arg4: memref<1x1x10x8x128xf32, #tpu.memory_space<vmem>>, %arg5: memref<1x1x8x128xf32, #tpu.memory_space<vmem>>, %arg6: memref<1x1x8x128xf32, #tpu.memory_space<vmem>>) attributes {dimension_semantics = [#tpu.dimension_semantics<parallel>, #tpu.dimension_semantics<parallel>], iteration_bounds = array<i64: 2, 1>, scalar_prefetch = 0 : i64, scratch_operands = 0 : i64, tpu.core_type = #tpu.core_type<tc>, window_params = [{transform_indices = @transform_0, window_bounds = array<i64: 1, 1, 10, 8, 128>}, {transform_indices = @transform_1, window_bounds = array<i64: 1, 1, 10, 8, 128>}, {transform_indices = @transform_2, window_bounds = array<i64: 1, 1, 10, 8, 128>}, {transform_indices = @transform_3, window_bounds = array<i64: 1, 1, 8, 128>}, {transform_indices = @transform_4, window_bounds = array<i64: 1, 1, 8, 128>}]} {
    %c0 = arith.constant 0 : index
    %c0_0 = arith.constant 0 : index
    %c0_1 = arith.constant 0 : index
    %c0_2 = arith.constant 0 : index
    %c0_3 = arith.constant 0 : index
    %0 = vector.load %arg2[%c0, %c0_0, %c0_1, %c0_2, %c0_3] : memref<1x1x10x8x128xf32, #tpu.memory_space<vmem>>, vector<1x1x10x8x128xf32>
    %1 = vector.shape_cast %0 : vector<1x1x10x8x128xf32> to vector<10x8x128xf32>
    %c0_4 = arith.constant 0 : index
    %c0_5 = arith.constant 0 : index
    %c0_6 = arith.constant 0 : index
    %c0_7 = arith.constant 0 : index
    %c0_8 = arith.constant 0 : index
    %2 = vector.load %arg3[%c0_4, %c0_5, %c0_6, %c0_7, %c0_8] : memref<1x1x10x8x128xf32, #tpu.memory_space<vmem>>, vector<1x1x10x8x128xf32>
    %3 = vector.shape_cast %2 : vector<1x1x10x8x128xf32> to vector<10x8x128xf32>
    %c0_9 = arith.constant 0 : index
    %c0_10 = arith.constant 0 : index
    %c0_11 = arith.constant 0 : index
    %c0_12 = arith.constant 0 : index
    %c0_13 = arith.constant 0 : index
    %4 = vector.load %arg4[%c0_9, %c0_10, %c0_11, %c0_12, %c0_13] : memref<1x1x10x8x128xf32, #tpu.memory_space<vmem>>, vector<1x1x10x8x128xf32>
    %5 = vector.shape_cast %4 : vector<1x1x10x8x128xf32> to vector<10x8x128xf32>
    %cst = arith.constant -7.000000e+00 : f32
    %6 = vector.broadcast %cst : f32 to vector<10x8x128xf32>
    %7 = arith.maximumf %5, %6 : vector<10x8x128xf32>
    %c0_14 = arith.constant 0 : index
    %c0_15 = arith.constant 0 : index
    %c0_16 = arith.constant 0 : index
    %c0_17 = arith.constant 0 : index
    %8 = vector.load %arg5[%c0_14, %c0_15, %c0_16, %c0_17] : memref<1x1x8x128xf32, #tpu.memory_space<vmem>>, vector<1x1x8x128xf32>
    %9 = vector.shape_cast %8 : vector<1x1x8x128xf32> to vector<1x8x128xf32>
    %10 = vector.broadcast %9 : vector<1x8x128xf32> to vector<10x8x128xf32>
    %11 = arith.subf %10, %3 : vector<10x8x128xf32>
    %cst_18 = arith.constant 0.000000e+00 : f32
    %12 = vector.broadcast %cst_18 : f32 to vector<10x8x128xf32>
    %13 = arith.subf %12, %7 : vector<10x8x128xf32>
    %14 = math.exp %13 : vector<10x8x128xf32>
    %cst_19 = arith.constant 0.00392156886 : f32
    %15 = vector.broadcast %cst_19 : f32 to vector<10x8x128xf32>
    %16 = arith.addf %11, %15 : vector<10x8x128xf32>
    %17 = arith.mulf %14, %16 : vector<10x8x128xf32>
    %cst_20 = arith.constant 0.00392156886 : f32
    %18 = vector.broadcast %cst_20 : f32 to vector<10x8x128xf32>
    %19 = arith.subf %11, %18 : vector<10x8x128xf32>
    %20 = arith.mulf %14, %19 : vector<10x8x128xf32>
    %21 = arith.mulf %14, %11 : vector<10x8x128xf32>
    %22 = math.absf %17 : vector<10x8x128xf32>
    %cst_21 = arith.constant 0.000000e+00 : f32
    %23 = vector.broadcast %cst_21 : f32 to vector<10x8x128xf32>
    %24 = arith.subf %23, %22 : vector<10x8x128xf32>
    %25 = math.exp %24 : vector<10x8x128xf32>
    %cst_22 = arith.constant 0.000000e+00 : f32
    %26 = vector.broadcast %cst_22 : f32 to vector<10x8x128xf32>
    %27 = arith.maximumf %17, %26 : vector<10x8x128xf32>
    %28 = math.log1p %25 : vector<10x8x128xf32>
    %29 = arith.addf %27, %28 : vector<10x8x128xf32>
    %cst_23 = arith.constant 1.000000e+00 : f32
    %30 = vector.broadcast %cst_23 : f32 to vector<10x8x128xf32>
    %31 = arith.addf %30, %25 : vector<10x8x128xf32>
    %cst_24 = arith.constant 1.000000e+00 : f32
    %32 = vector.broadcast %cst_24 : f32 to vector<10x8x128xf32>
    %33 = arith.divf %32, %31 : vector<10x8x128xf32>
    %cst_25 = arith.constant 0.000000e+00 : f32
    %34 = vector.broadcast %cst_25 : f32 to vector<10x8x128xf32>
    %35 = arith.cmpf oge, %17, %34 : vector<10x8x128xf32>
    %36 = arith.mulf %25, %33 : vector<10x8x128xf32>
    %37 = arith.select %35, %33, %36 : vector<10x8x128xi1>, vector<10x8x128xf32>
    %38 = math.absf %20 : vector<10x8x128xf32>
    %cst_26 = arith.constant 0.000000e+00 : f32
    %39 = vector.broadcast %cst_26 : f32 to vector<10x8x128xf32>
    %40 = arith.subf %39, %38 : vector<10x8x128xf32>
    %41 = math.exp %40 : vector<10x8x128xf32>
    %cst_27 = arith.constant 0.000000e+00 : f32
    %42 = vector.broadcast %cst_27 : f32 to vector<10x8x128xf32>
    %43 = arith.maximumf %20, %42 : vector<10x8x128xf32>
    %44 = math.log1p %41 : vector<10x8x128xf32>
    %45 = arith.addf %43, %44 : vector<10x8x128xf32>
    %cst_28 = arith.constant 1.000000e+00 : f32
    %46 = vector.broadcast %cst_28 : f32 to vector<10x8x128xf32>
    %47 = arith.addf %46, %41 : vector<10x8x128xf32>
    %cst_29 = arith.constant 1.000000e+00 : f32
    %48 = vector.broadcast %cst_29 : f32 to vector<10x8x128xf32>
    %49 = arith.divf %48, %47 : vector<10x8x128xf32>
    %cst_30 = arith.constant 0.000000e+00 : f32
    %50 = vector.broadcast %cst_30 : f32 to vector<10x8x128xf32>
    %51 = arith.cmpf oge, %20, %50 : vector<10x8x128xf32>
    %52 = arith.mulf %41, %49 : vector<10x8x128xf32>
    %53 = arith.select %51, %49, %52 : vector<10x8x128xi1>, vector<10x8x128xf32>
    %54 = arith.subf %17, %29 : vector<10x8x128xf32>
    %cst_31 = arith.constant 0.000000e+00 : f32
    %55 = vector.broadcast %cst_31 : f32 to vector<10x8x128xf32>
    %56 = arith.subf %55, %45 : vector<10x8x128xf32>
    %57 = arith.subf %37, %53 : vector<10x8x128xf32>
    %cst_32 = arith.constant 0.000000e+00 : f32
    %58 = vector.broadcast %cst_32 : f32 to vector<10x8x128xf32>
    %59 = arith.maximumf %21, %58 : vector<10x8x128xf32>
    %60 = math.absf %21 : vector<10x8x128xf32>
    %cst_33 = arith.constant 0.000000e+00 : f32
    %61 = vector.broadcast %cst_33 : f32 to vector<10x8x128xf32>
    %62 = arith.subf %61, %60 : vector<10x8x128xf32>
    %63 = math.exp %62 : vector<10x8x128xf32>
    %64 = math.log1p %63 : vector<10x8x128xf32>
    %65 = arith.addf %59, %64 : vector<10x8x128xf32>
    %66 = arith.subf %21, %7 : vector<10x8x128xf32>
    %cst_34 = arith.constant 2.000000e+00 : f32
    %67 = vector.broadcast %cst_34 : f32 to vector<10x8x128xf32>
    %68 = arith.mulf %67, %65 : vector<10x8x128xf32>
    %69 = arith.subf %66, %68 : vector<10x8x128xf32>
    %cst_35 = arith.constant 9.99999974E-6 : f32
    %70 = vector.broadcast %cst_35 : f32 to vector<10x8x128xf32>
    %71 = arith.cmpf ogt, %57, %70 : vector<10x8x128xf32>
    %cst_36 = arith.constant 9.99999996E-13 : f32
    %72 = vector.broadcast %cst_36 : f32 to vector<10x8x128xf32>
    %73 = arith.maximumf %57, %72 : vector<10x8x128xf32>
    %74 = math.log %73 : vector<10x8x128xf32>
    %cst_37 = arith.constant 4.8481164 : f32
    %75 = vector.broadcast %cst_37 : f32 to vector<10x8x128xf32>
    %76 = arith.subf %69, %75 : vector<10x8x128xf32>
    %77 = arith.select %71, %74, %76 : vector<10x8x128xi1>, vector<10x8x128xf32>
    %cst_38 = arith.constant 9.990000e-01 : f32
    %78 = vector.broadcast %cst_38 : f32 to vector<1x8x128xf32>
    %79 = arith.cmpf ogt, %9, %78 : vector<1x8x128xf32>
    %80 = vector.shape_cast %79 : vector<1x8x128xi1> to vector<1x8x128xi1>
    %81 = vector.broadcast %80 : vector<1x8x128xi1> to vector<10x8x128xi1>
    %82 = arith.select %81, %56, %77 : vector<10x8x128xi1>, vector<10x8x128xf32>
    %cst_39 = arith.constant -9.990000e-01 : f32
    %83 = vector.broadcast %cst_39 : f32 to vector<1x8x128xf32>
    %84 = arith.cmpf olt, %9, %83 : vector<1x8x128xf32>
    %85 = vector.shape_cast %84 : vector<1x8x128xi1> to vector<1x8x128xi1>
    %86 = vector.broadcast %85 : vector<1x8x128xi1> to vector<10x8x128xi1>
    %87 = arith.select %86, %54, %82 : vector<10x8x128xi1>, vector<10x8x128xf32>
    %cst_40 = arith.constant dense<0xFF800000> : vector<8x128xf32>
    %88 = vector.multi_reduction <maximumf>, %1, %cst_40 [0] : vector<10x8x128xf32> to vector<8x128xf32>
    %89 = vector.shape_cast %88 : vector<8x128xf32> to vector<1x8x128xf32>
    %90 = vector.broadcast %89 : vector<1x8x128xf32> to vector<10x8x128xf32>
    %91 = arith.subf %1, %90 : vector<10x8x128xf32>
    %92 = math.exp %91 : vector<10x8x128xf32>
    %cst_41 = arith.constant dense<0.000000e+00> : vector<8x128xf32>
    %93 = vector.multi_reduction <add>, %92, %cst_41 [0] : vector<10x8x128xf32> to vector<8x128xf32>
    %94 = vector.shape_cast %93 : vector<8x128xf32> to vector<1x8x128xf32>
    %95 = math.log %94 : vector<1x8x128xf32>
    %96 = arith.addf %89, %95 : vector<1x8x128xf32>
    %97 = arith.addf %87, %1 : vector<10x8x128xf32>
    %cst_42 = arith.constant dense<0xFF800000> : vector<8x128xf32>
    %98 = vector.multi_reduction <maximumf>, %97, %cst_42 [0] : vector<10x8x128xf32> to vector<8x128xf32>
    %99 = vector.shape_cast %98 : vector<8x128xf32> to vector<1x8x128xf32>
    %100 = vector.broadcast %99 : vector<1x8x128xf32> to vector<10x8x128xf32>
    %101 = arith.subf %97, %100 : vector<10x8x128xf32>
    %102 = math.exp %101 : vector<10x8x128xf32>
    %cst_43 = arith.constant dense<0.000000e+00> : vector<8x128xf32>
    %103 = vector.multi_reduction <add>, %102, %cst_43 [0] : vector<10x8x128xf32> to vector<8x128xf32>
    %104 = vector.shape_cast %103 : vector<8x128xf32> to vector<1x8x128xf32>
    %105 = math.log %104 : vector<1x8x128xf32>
    %106 = arith.addf %99, %105 : vector<1x8x128xf32>
    %107 = arith.subf %96, %106 : vector<1x8x128xf32>
    %c0_44 = arith.constant 0 : index
    %c0_45 = arith.constant 0 : index
    %c0_46 = arith.constant 0 : index
    %c0_47 = arith.constant 0 : index
    %108 = vector.load %arg6[%c0_44, %c0_45, %c0_46, %c0_47] : memref<1x1x8x128xf32, #tpu.memory_space<vmem>>, vector<1x1x8x128xf32>
    %109 = vector.shape_cast %108 : vector<1x1x8x128xf32> to vector<1x8x128xf32>
    %110 = vector.shape_cast %107 : vector<1x8x128xf32> to vector<1x1x8x128xf32>
    tpu.vector_store %arg6[%c0_44, %c0_45, %c0_46, %c0_47], %110 {strides = array<i32>} : memref<1x1x8x128xf32, #tpu.memory_space<vmem>>, vector<1x1x8x128xf32>,
    return
  }
  func.func @transform_0(%arg0: i32, %arg1: i32) -> (i32, i32, i32, i32, i32) {
    %c0_i32 = arith.constant 0 : i32
    %c0_i32_0 = arith.constant 0 : i32
    %c0_i32_1 = arith.constant 0 : i32
    %c0_i32_2 = arith.constant 0 : i32
    return %arg0, %c0_i32, %c0_i32_0, %c0_i32_1, %arg1 : i32, i32, i32, i32, i32
  }
  func.func @transform_1(%arg0: i32, %arg1: i32) -> (i32, i32, i32, i32, i32) {
    %c1_i32 = arith.constant 1 : i32
    %c0_i32 = arith.constant 0 : i32
    %c0_i32_0 = arith.constant 0 : i32
    %c0_i32_1 = arith.constant 0 : i32
    return %arg0, %c1_i32, %c0_i32, %c0_i32_0, %arg1 : i32, i32, i32, i32, i32
  }
  func.func @transform_2(%arg0: i32, %arg1: i32) -> (i32, i32, i32, i32, i32) {
    %c2_i32 = arith.constant 2 : i32
    %c0_i32 = arith.constant 0 : i32
    %c0_i32_0 = arith.constant 0 : i32
    %c0_i32_1 = arith.constant 0 : i32
    return %arg0, %c2_i32, %c0_i32, %c0_i32_0, %arg1 : i32, i32, i32, i32, i32
  }
  func.func @transform_3(%arg0: i32, %arg1: i32) -> (i32, i32, i32, i32) {
    %c0_i32 = arith.constant 0 : i32
    %c0_i32_0 = arith.constant 0 : i32
    %c0_i32_1 = arith.constant 0 : i32
    return %arg0, %c0_i32, %c0_i32_0, %arg1 : i32, i32, i32, i32
  }
  func.func @transform_4(%arg0: i32, %arg1: i32) -> (i32, i32, i32, i32) {
    %c0_i32 = arith.constant 0 : i32
    %c0_i32_0 = arith.constant 0 : i32
    %c0_i32_1 = arith.constant 0 : i32
    return %arg0, %c0_i32, %c0_i32_0, %arg1 : i32, i32, i32, i32
  }
}

</mosaic_0001>

<bundles_post_ra>
// kernel: tpu_custom_call.1
= control target key start
LH: loop header
LB: loop body
LE: loop exit
PB: predicated region body
PF: predicated region fallthrough
CT: control target
= control target key end

     0   :  { %s4336_s0 = inlined_call_operand.hbm [shape: f32[2,3,10,8,128], index: 0, kind: input, shape index: {}]   ;;  %s4337_s1 = inlined_call_operand.hbm [shape: f32[2,3,10,8,128], index: 1, kind: input, shape index: {}]   ;;  %s4338_s2 = inlined_call_operand.hbm [shape: f32[2,3,10,8,128], index: 2, kind: input, shape index: {}]   ;;  %s4339_s3 = inlined_call_operand.hbm [shape: f32[2,1,8,128], index: 3, kind: input, shape index: {}]   ;;  %s4340_s4 = inlined_call_operand.hbm [shape: f32[2,1,8,128], index: 4, kind: output, shape index: {}]  }
   0x1   :  { %4425 = sst [smem:[#allocation81_spill]] %s4336_s0 }
   0x2   :  { %4426 = sst [smem:[#allocation82_spill]] %s4337_s1 }
   0x3   :  { %9 = vsyncpa [#allocation3], 0 }
   0x4   :  { %11 = vsyncpa [#allocation3 + $0x1], 0 }
   0x5   :  { %12 = vsyncpa [#allocation6], 0 }
   0x6   :  { %14 = vsyncpa [#allocation6 + $0x1], 0 }
   0x7   :  { %15 = vsyncpa [#allocation9], 0 }
   0x8   :  { %17 = vsyncpa [#allocation9 + $0x1], 0 }
   0x9   :  { %18 = vsyncpa [#allocation4], 0 }
   0xa   :  { %20 = vsyncpa [#allocation4 + $0x1], 0  ;;  %s2362_s15 = smov 0   ;;  %s2364_s16 = smov 0  }
   0xb   :  { %s2366_s17 = smov 0   ;;  %s2368_s18 = smov 0  }
   0xc   :  { %s2370_s19 = smov 0   ;;  %s2372_s20 = smov 0  }
   0xd LB: > { %4427 = sst [smem:[#allocation15_spill]] %s2313_s15  ;;  %s2393_s21 = sadd.s32 4294967295, %s2333_s20   ;;  %s2333_s20 = sphi %s2372_s20, %s26_s20   ;;  %s2329_s19 = sphi %s2370_s19, %s4824_s19   ;;  %s2325_s18 = sphi %s2368_s18, %s4823_s18   ;;  %s2321_s17 = sphi %s2366_s17, %s4819_s17   ;;  %s2317_s16 = sphi %s2364_s16, %s4822_s16   ;;  %s2313_s15 = sphi %s2362_s15, %s4821_s15  }
   0xe   : > { %4428 = sst [smem:[#allocation16_spill]] %s2321_s17  ;;  %s1759_s22 = sadd.s32 4294967294, %s2333_s20  }
   0xf   : > { %4429 = sst [smem:[#allocation17_spill]] %s2333_s20  ;;  %s38_s23 = sadd.s32 1, %s2329_s19 }
  0x10   : > { %s47_s24 = sadd.s32 1, %s2321_s17  ;;  %p40_p0 = scmp.ge.s32.totalorder %s38_s23, 2 }
  0x11   : > { %p54_p1 = scmp.ne.s32.totalorder %s2321_s17, %s2317_s16  ;;  %p55_p2 = scmp.eq.s32.totalorder %s2333_s20, 0 }
  0x12   : > { %p60_p3 = scmp.ne.s32.totalorder %s2317_s16, %s2313_s15  ;;  %s4826_s23 = smov (%p40_p0, %s38_s23), 0 }
  0x13   : > { %4430 = sst [smem:[#allocation18_spill]] %s4826_s23  ;;  %p2405_p4 = por %p55_p2, %p54_p1 }
  0x14   : > { %p61_p5 = scmp.eq.s32.totalorder %s2393_s21, 0  ;;  %s42_s26 = ssub.s32 %s2329_s19, %s4826_s23 }
  0x15   : > { %p170_p6 = scmp.eq.s32.totalorder %s2393_s21, 1  ;;  %p45_p7 = scmp.eq.s32.totalorder %s42_s26, 0 }
  0x16   : > { %p2413_p8 = por %p61_p5, %p60_p3  ;;  %p176_p10 = scmp.eq.s32.totalorder %s1759_s22, 1 }
  0x17   : > { %p2417_p9 = por %p170_p6, %p54_p1  ;;  %p1761_p12 = scmp.ge.s32.totalorder %s2333_s20, 2 }
  0x18   : > { %s2422_s29 = scalar_select %p45_p7, %s2321_s17, %s47_s24  }
  0x19   : > { %p2424_p11 = por %p176_p10, %p60_p3  ;;  %p1826_p13 = scmp.lt.s32.totalorder %s2333_s20, 2 }
  0x1a   : > { %4434 = sst [smem:[#allocation19_spill]] %s2422_s29  ;;  %s2431_s5 = sand.u32 1, %s2321_s17  }
  0x1b   : > { %s4435_s30 = scalar_select %p2424_p11, 1, 0 }
  0x1c   : > { %s2434_s6 = smul.u32 80, %s2431_s5  ;;  %p2441_p0 = pnand %p1826_p13, %p2405_p4 }
  0x1d   : > { %4436 = sst [smem:[#allocation20_spill]] %s4435_s30  ;;  %s2437_s7 = smul.u32 240, %s2329_s19 }
  0x1e   : > { %s219_s9 = sand.u32 1, %s2333_s20   ;;  %s4438_s1 = sld [smem:[#allocation82_spill]] }
  0x1f   : > { %s223_s14 = scalar_lea.vmem [#allocation5], %s2434_s6  ;;  %p1767_p1 = scmp.ge.s32.totalorder %s2333_s20, 1 }
  0x20   : > { %s233_s22 = sshll.u32 %s223_s14, 4  ;;  %s220_s25 = scalar_lea.sflag [#allocation6], %s219_s9  ;;  %s234_s22 = int_to_ptr.vmem [resolvable:$true] %s233_s22 }
  0x21   : > { %s2335_s26 = smov 128   ;;  %s2336_s23 = smov 8  }
  0x22   : > { %p285_p2 = scmp.lt.s32.totalorder %s2333_s20, 3  ;;  %s4440_s0 = sld [smem:[#allocation81_spill]] }
  0x23   : > { %s200_s14 = scalar_lea.vmem [#allocation2], %s2434_s6  ;;  %s197_s9 = scalar_lea.sflag [#allocation3], %s2431_s5 }
  0x24   : > { %s1647_s12 = scalar_lea.hbm %s4438_s1, %s2437_s7  ;;  %p2455_p3 = pnand %p1767_p1, %p285_p2 }
  0x25   : > { %s1648_s13 = scalar_lea.hbm %s1647_s12, 80  ;;  %s209_s1 = sshll.u32 %s200_s14, 4  ;;  %s210_s1 = int_to_ptr.vmem [resolvable:$true] %s209_s1 }
  0x26   : > { %s231_s24 = sshll.u32 %s1648_s13, 4  ;;  %s1655_s17 = scalar_lea.hbm %s4338_s2, %s2437_s7  ;;  %s232_s24 = int_to_ptr.hbm [resolvable:$true] %s231_s24 }
  0x27   : > { %1815 = dma.hbm_to_vmem [thread:$0]  (!%p2441_p0), %s232_s24, 1280, %s234_s22, %s220_s25, %s2335_s26, %s2335_s26, %s2336_s23  }
  0x28   : > { %s206_s13 = scalar_lea.hbm %s4440_s0, %s2437_s7  ;;  %s247_s20 = scalar_lea.vmem [#allocation7], %s2434_s6 }
  0x29   : > { %s207_s29 = sshll.u32 %s206_s13, 4  ;;  %s257_s11 = sshll.u32 %s247_s20, 4  ;;  %s208_s29 = int_to_ptr.hbm [resolvable:$true] %s207_s29  ;;  %s258_s11 = int_to_ptr.vmem [resolvable:$true] %s257_s11 }
  0x2a   : > { %1812 = dma.hbm_to_vmem [thread:$0]  (!%p2441_p0), %s208_s29, 1280, %s210_s1, %s197_s9, %s2335_s26, %s2335_s26, %s2336_s23  }
  0x2b   : > { %s1656_s12 = scalar_lea.hbm %s1655_s17, 160  ;;  %s1765_s30 = sshll.u32 %s2431_s5, 3 }
  0x2c   : > { %s255_s0 = sshll.u32 %s1656_s12, 4  ;;  %s1766_s13 = sshll.u32 %s2329_s19, 3  ;;  %s256_s0 = int_to_ptr.hbm [resolvable:$true] %s255_s0 }
  0x2d   : > { %1818 = dma.hbm_to_vmem [thread:$0]  (!%p2441_p0), %s256_s0, 1280, %s258_s11, %s220_s25, %s2335_s26, %s2335_s26, %s2336_s23  }
  0x2e   : > { %s276_s1 = scalar_lea.hbm %s4339_s3, %s1766_s13  ;;  %s271_s29 = scalar_lea.vmem [#allocation8], %s1765_s30 }
  0x2f   : > { %s280_s9 = sshll.u32 %s271_s29, 4  ;;  %s278_s22 = sshll.u32 %s276_s1, 4  ;;  %s281_s9 = int_to_ptr.vmem [resolvable:$true] %s280_s9  ;;  %s279_s22 = int_to_ptr.hbm [resolvable:$true] %s278_s22 }
  0x30   : > { %s268_s6 = scalar_lea.sflag [#allocation9], %s2431_s5  ;;  %289 = sbr.rel (%p2455_p3) target bundleno = 386 (0x182), region = 36 }
  0x31   : > { %1821 = dma.hbm_to_vmem [thread:$0]  (!%p2441_p0), %s279_s22, 128, %s281_s9, %s268_s6  }
  0x35   : > { %s2485_s17 = sand.u32 1, %s2317_s16  }
  0x36   : > { %s1798_s0 = smul.u32 80, %s2485_s17  ;;  %s292_s15 = scalar_lea.sflag [#allocation3], %s2485_s17 }
  0x38   : > { %s2489_s20 = scalar_lea.vmem [#allocation2], %s1798_s0 }
  0x39   : > { %2296 = dma.done.wait (%p2413_p8), %s292_s15, 1280  }
  0x3a   : > { %2298 = vsyncadd (%p2413_p8), %s292_s15, 4294966016  ;;  %s301_s23 = sand.u32 1, %s2393_s21   ;;  %s2496_s5 = scalar_lea.vmem [#allocation5], %s1798_s0 }
  0x3b   : > { %s302_s30 = scalar_lea.sflag [#allocation6], %s301_s23 }
  0x3c   : > { %2300 = dma.done.wait (%p2413_p8), %s302_s30, 2560  }
  0x3d   : > { %2302 = vsyncadd (%p2413_p8), %s302_s30, 4294964736  ;;  %s1768_s7 = sshll.u32 %s2485_s17, 3  ;;  %s315_s8 = scalar_lea.vmem [#allocation7], %s1798_s0 }
  0x3e   : > { %s322_s25 = scalar_lea.sflag [#allocation9], %s2485_s17  ;;  %s2506_s26 = scalar_lea.vmem [#allocation8], %s1768_s7 }
  0x3f   : > { %2304 = dma.done.wait (%p2413_p8), %s322_s25, 128  }
  0x40   : > { %2306 = vsyncadd (%p2413_p8), %s322_s25, 4294967168  ;;  %v2512_v0 = vld [vmem:[%s315_s8] sm:$0xff]  ;;  %v2514_v1 = vld [vmem:[%s315_s8 + $0x8] sm:$0xff]  ;;  %s1791_s21 = sshll.u32 %s2325_s18, 3  ;;  %s365_s11 = scalar_lea.vmem [#allocation10], %s1768_s7 }
  0x41   : > { %4441 = vst [vmem:[#allocation21_spill] sm:$0xff] %v2512_v0  ;;  %v2516_v2 = vld [vmem:[%s315_s8 + $0x10] sm:$0xff]  ;;  %v4356_v3 = vmax.f32 %v2512_v0, -7.0  ;;  %v2519_v4 = vld [vmem:[%s315_s8 + $0x18] sm:$0xff]  ;;  %v4355_v5 = vmax.f32 %v2514_v1, -7.0  ;;  %v2522_v6 = vld [vmem:[%s315_s8 + $0x20] sm:$0xff]  ;;  %s1599_s24 = scalar_lea.hbm %s4340_s4, %s1791_s21 }
  0x42   : > { %4442 = vst [vmem:[#allocation22_spill] sm:$0xff] %v2514_v1  ;;  %v2524_v7 = vld [vmem:[%s315_s8 + $0x28] sm:$0xff]  ;;  %v4354_v8 = vmax.f32 %v2516_v2, -7.0  ;;  %v2527_v9 = vld [vmem:[%s315_s8 + $0x30] sm:$0xff]  ;;  %v4353_v10 = vmax.f32 %v2519_v4, -7.0  ;;  %v2532_v12 = vld [vmem:[%s315_s8 + $0x38] sm:$0xff] }
  0x43   : > { %4443 = vst [vmem:[#allocation23_spill] sm:$0xff] %v2516_v2  ;;  %v417_v11 = vsub.f32 0.0, %v4356_v3  ;;  %v4352_v13 = vmax.f32 %v2522_v6, -7.0  ;;  %v418_v14 = vsub.f32 0.0, %v4355_v5  ;;  %v2537_v15 = vld [vmem:[%s315_s8 + $0x40] sm:$0xff]  ;;  %v4351_v16 = vmax.f32 %v2524_v7, -7.0 }
  0x44   : > { %4444 = vst [vmem:[#allocation24_spill] sm:$0xff] %v2519_v4  ;;  %v2540_v17 = vld [vmem:[%s315_s8 + $0x48] sm:$0xff]  ;;  %v4350_v18 = vmax.f32 %v2527_v9, -7.0  ;;  %v419_v19 = vsub.f32 0.0, %v4354_v8  ;;  %v4349_v20 = vmax.f32 %v2532_v12, -7.0  ;;  %v420_v21 = vsub.f32 0.0, %v4353_v10 }
  0x45   : > { %4445 = vst [vmem:[#allocation25_spill] sm:$0xff] %v2522_v6  ;;  %v427_v22 = vmul.f32 1.442695, %v417_v11  ;;  %v4348_v23 = vmax.f32 %v2537_v15, -7.0  ;;  %v421_v24 = vsub.f32 0.0, %v4352_v13  ;;  %v376_v26 = vld [vmem:[%s2496_s5] sm:$0xff] }
  0x46   : > { %4446 = vst [vmem:[#allocation26_spill] sm:$0xff] %v2524_v7  ;;  %v429_v25 = vmul.f32 1.442695, %v418_v14  ;;  %v4347_v27 = vmax.f32 %v2540_v17, -7.0  ;;  %v406_v28 = vld [vmem:[%s2506_s26] sm:$0xff]  ;;  %v422_v29 = vsub.f32 0.0, %v4351_v16 }
  0x47   : > { %4447 = vst [vmem:[#allocation27_spill] sm:$0xff] %v2527_v9  ;;  %v377_v30 = vld [vmem:[%s2496_s5 + $0x8] sm:$0xff]  ;;  %v423_v31 = vsub.f32 0.0, %v4350_v18  ;;  %v431_v32 = vmul.f32 1.442695, %v419_v19  ;;  %v424_v33 = vsub.f32 0.0, %v4349_v20  ;;  %1878 = vpow2.f32 %v427_v22 }
  0x48   : > { %4448 = vst [vmem:[#allocation28_spill] sm:$0xff] %v2532_v12  ;;  %v433_v34 = vmul.f32 1.442695, %v420_v21  ;;  %v378_v35 = vld [vmem:[%s2496_s5 + $0x10] sm:$0xff]  ;;  %v2562_v36 = vsub.f32 %v406_v28, %v376_v26  ;;  %v425_v37 = vsub.f32 0.0, %v4348_v23  ;;  %1880 = vpow2.f32 %v429_v25  ;;  %v379_v39 = vld [vmem:[%s2496_s5 + $0x18] sm:$0xff] }
  0x49   : > { %4449 = vst [vmem:[#allocation29_spill] sm:$0xff] %v2537_v15  ;;  %v435_v38 = vmul.f32 1.442695, %v421_v24  ;;  %v2567_v40 = vsub.f32 %v406_v28, %v377_v30  ;;  %v426_v41 = vsub.f32 0.0, %v4347_v27  ;;  %v437_v42 = vmul.f32 1.442695, %v422_v29 }
  0x4a   : > { %4450 = vst [vmem:[#allocation30_spill] sm:$0xff] %v2540_v17  ;;  %v380_v43 = vld [vmem:[%s2496_s5 + $0x20] sm:$0xff]  ;;  %1882 = vpow2.f32 %v431_v32  ;;  %v439_v44 = vmul.f32 1.442695, %v423_v31  ;;  %v381_v45 = vld [vmem:[%s2496_s5 + $0x28] sm:$0xff]  ;;  %v382_v46 = vld [vmem:[%s2496_s5 + $0x30] sm:$0xff]  ;;  %v2574_v47 = vsub.f32 %v406_v28, %v378_v35  ;;  %v2578_v51 = vsub.f32 %v406_v28, %v379_v39 }
  0x4b   : > { %1884 = vpow2.f32 %v433_v34  ;;  %v441_v48 = vmul.f32 1.442695, %v424_v33  ;;  %v383_v49 = vld [vmem:[%s2496_s5 + $0x38] sm:$0xff]  ;;  %v384_v50 = vld [vmem:[%s2496_s5 + $0x40] sm:$0xff]  ;;  %v443_v52 = vmul.f32 1.442695, %v425_v37  ;;  %v2584_v56 = vsub.f32 %v406_v28, %v380_v43 }
  0x4c   : > { %1886 = vpow2.f32 %v435_v38  ;;  %v447_v53 = vadd.f32 0.003921569, %v2562_v36  ;;  %v385_v55 = vld [vmem:[%s2496_s5 + $0x48] sm:$0xff]  ;;  %v445_v57 = vmul.f32 1.442695, %v426_v41  ;;  %v2589_v60 = vsub.f32 %v406_v28, %v381_v45  ;;  %s1601_s12 = sshll.u32 %s365_s11, 4  ;;  %s1602_s12 = int_to_ptr.vmem [resolvable:$true] %s1601_s12 }
  0x4d   : > { %v2581_v54 = vpop.eup %1878  ;;  %1888 = vpow2.f32 %v437_v42  ;;  %v448_v58 = vadd.f32 0.003921569, %v2567_v40  ;;  %v2591_v61 = vsub.f32 %v406_v28, %v382_v46  ;;  %v2593_v62 = vsub.f32 %v406_v28, %v383_v49  ;;  %s1603_s13 = sshll.u32 %s1599_s24, 4  ;;  %s1588_s18 = scalar_lea.sflag [#allocation4], %s2485_s17  ;;  %s1604_s13 = int_to_ptr.hbm [resolvable:$true] %s1603_s13 }
  0x4e   : > { %v2587_v59 = vpop.eup %1880  ;;  %1890 = vpow2.f32 %v439_v44  ;;  %v2595_v63 = vsub.f32 %v406_v28, %v384_v50  ;;  %v449_v11 = vadd.f32 0.003921569, %v2574_v47  ;;  %v2600_v19 = vsub.f32 %v406_v28, %v385_v55  ;;  %s2257_s14 = sshra.s32 %s1604_s13, 4  ;;  %s2263_s22 = scalar_lea.hbm %s4340_s4, 16  ;;  %s2258_s14 = int_to_ptr.hbm [resolvable:$true] %s2257_s14 }
  0x4f   : > { %1892 = vpow2.f32 %v441_v48  ;;  %v450_v21 = vadd.f32 0.003921569, %v2578_v51  ;;  %v2604_v22 = vmul.f32 %v2581_v54, %v447_v53  ;;  %v451_v25 = vadd.f32 0.003921569, %v2584_v56  ;;  %s2259_s1 = scalar_lea.hbm %s2258_s14, 8  ;;  %p2264_p7 = scmp.lt.s32.totalorder %s2258_s14, %s4340_s4 }
  0x50   : > { %v2598_v14 = vpop.eup %1882  ;;  %1894 = vpow2.f32 %v443_v52  ;;  %v2608_v26 = vmul.f32 %v2587_v59, %v448_v58  ;;  %v452_v30 = vadd.f32 0.003921569, %v2589_v60  ;;  %v453_v28 = vadd.f32 0.003921569, %v2591_v61  ;;  %p2260_p4 = scmp.ne.s32.totalorder %s2258_s14, %s2259_s1  ;;  %p2265_p8 = scmp.lt.s32.totalorder %s2263_s22, %s2259_s1 }
  0x51   : > { %4451 = vst [vmem:[#allocation31_spill] sm:$0xff] %v2604_v22  ;;  %v1885_v24 = vpop.eup %1884  ;;  %1896 = vpow2.f32 %v445_v57  ;;  %v454_v32 = vadd.f32 0.003921569, %v2593_v62  ;;  %v2618_v33 = vmul.f32 %v2598_v14, %v449_v11  ;;  %v455_v35 = vadd.f32 0.003921569, %v2595_v63 }
  0x52   : > { %4452 = vst [vmem:[#allocation32_spill] sm:$0xff] %v2608_v26  ;;  %v2610_v29 = vpop.eup %1886  ;;  %v456_v37 = vadd.f32 0.003921569, %v2600_v19  ;;  %v2624_v38 = vmul.f32 %v1885_v24, %v450_v21  ;;  %v497_v39 = vand.u32 2147483647, %v2604_v22  ;;  %p2261_p5 = pnand %p2260_p4, %p2417_p9  ;;  %p2266_p10 = por %p2265_p8, %p2264_p7 }
  0x53   : > { %v2613_v31 = vpop.eup %1888  ;;  %4453 = vst [vmem:[#allocation33_spill] sm:$0xff] %v2618_v33  ;;  %v2630_v42 = vmul.f32 %v2610_v29, %v451_v25  ;;  %v1770_v43 = vadd.f32 -0.003921569, %v2562_v36  ;;  %v1771_v44 = vadd.f32 -0.003921569, %v2567_v40 }
  0x54   : > { %v2620_v34 = vpop.eup %1890  ;;  %4454 = vst [vmem:[#allocation34_spill] sm:$0xff] %v2624_v38  ;;  %v498_v45 = vand.u32 2147483647, %v2608_v26  ;;  %v2636_v48 = vmul.f32 %v2613_v31, %v452_v30  ;;  %v1772_v49 = vadd.f32 -0.003921569, %v2574_v47  ;;  %v507_v30 = vsub.f32 0.0, %v497_v39  ;;  %p2262_p6 = pneg %p2261_p5 }
  0x55   : > { %v2627_v41 = vpop.eup %1892  ;;  %4455 = vst [vmem:[#allocation35_spill] sm:$0xff] %v2630_v42  ;;  %v1773_v50 = vadd.f32 -0.003921569, %v2578_v51  ;;  %v1774_v52 = vadd.f32 -0.003921569, %v2584_v56  ;;  %v2642_v55 = vmul.f32 %v2620_v34, %v453_v28  ;;  %v2661_v8 = vmul.f32 %v2581_v54, %v1770_v43 }
  0x56   : > { %v1895_v46 = vpop.eup %1894  ;;  %4456 = vst [vmem:[#allocation36_spill] sm:$0xff] %v2636_v48  ;;  %v1775_v57 = vadd.f32 -0.003921569, %v2589_v60  ;;  %v1776_v58 = vadd.f32 -0.003921569, %v2591_v61  ;;  %v2650_v27 = vmul.f32 %v2627_v41, %v454_v32  ;;  %v508_v28 = vsub.f32 0.0, %v498_v45  ;;  %p2267_p13 = pnand %p2266_p10, %p2262_p6 }
  0x57   : > { %v1897_v53 = vpop.eup %1896  ;;  %4457 = vst [vmem:[#allocation37_spill] sm:$0xff] %v2642_v55  ;;  %v499_v11 = vand.u32 2147483647, %v2618_v33  ;;  %v1777_v21 = vadd.f32 -0.003921569, %v2593_v62  ;;  %v2654_v18 = vmul.f32 %v1895_v46, %v455_v35  ;;  %v2664_v39 = vmul.f32 %v2587_v59, %v1771_v44 }
  0x58   : > { %v500_v25 = vand.u32 2147483647, %v2624_v38  ;;  %4458 = vst [vmem:[#allocation38_spill] sm:$0xff] %v2650_v27  ;;  %v1778_v23 = vadd.f32 -0.003921569, %v2595_v63  ;;  %v2656_v16 = vmul.f32 %v1897_v53, %v456_v37  ;;  %v2668_v3 = vmul.f32 %v2598_v14, %v1772_v49 }
  0x59   : > { %v501_v20 = vand.u32 2147483647, %v2630_v42  ;;  %4459 = vst [vmem:[#allocation39_spill] sm:$0xff] %v2654_v18  ;;  %v1779_v13 = vadd.f32 -0.003921569, %v2600_v19  ;;  %v509_v5 = vsub.f32 0.0, %v499_v11  ;;  %v2670_v35 = vmul.f32 %v1885_v24, %v1773_v50 }
  0x5a   : > { %4460 = vst [vmem:[#allocation40_spill] sm:$0xff] %v2656_v16  ;;  %v502_v10 = vand.u32 2147483647, %v2636_v48  ;;  %v503_v32 = vand.u32 2147483647, %v2642_v55  ;;  %v510_v37 = vsub.f32 0.0, %v500_v25  ;;  %v2673_v17 = vmul.f32 %v2610_v29, %v1774_v52 }
  0x5b   : > { %v517_v45 = vmul.f32 1.442695, %v507_v30  ;;  %v504_v15 = vand.u32 2147483647, %v2650_v27  ;;  %v511_v43 = vsub.f32 0.0, %v501_v20  ;;  %v2678_v44 = vmul.f32 %v2581_v54, %v2562_v36 }
  0x5c   : > { %4461 = vst [vmem:[#allocation41_spill] sm:$0xff] %v2673_v17  ;;  %v519_v12 = vmul.f32 1.442695, %v508_v28  ;;  %v505_v11 = vand.u32 2147483647, %v2654_v18  ;;  %v512_v9 = vsub.f32 0.0, %v502_v10  ;;  %v2683_v50 = vmul.f32 %v2613_v31, %v1775_v57 }
  0x5d   : > { %4462 = vst [vmem:[#allocation42_spill] sm:$0xff] %v2678_v44  ;;  %v506_v49 = vand.u32 2147483647, %v2656_v16  ;;  %v2687_v52 = vmul.f32 %v2587_v59, %v2567_v40  ;;  %v513_v25 = vsub.f32 0.0, %v503_v32  ;;  %v521_v30 = vmul.f32 1.442695, %v509_v5 }
  0x5e   : > { %4463 = vst [vmem:[#allocation43_spill] sm:$0xff] %v2683_v50  ;;  %v2691_v20 = vmul.f32 %v2598_v14, %v2574_v47  ;;  %v2694_v36 = vmul.f32 %v1885_v24, %v2578_v51  ;;  %1898 = vpow2.f32 %v517_v45  ;;  %v523_v54 = vmul.f32 1.442695, %v510_v37 }
  0x5f   : > { %4464 = vst [vmem:[#allocation44_spill] sm:$0xff] %v2687_v52  ;;  %v2697_v10 = vmul.f32 %v2620_v34, %v1776_v58  ;;  %v514_v57 = vsub.f32 0.0, %v504_v15  ;;  %1900 = vpow2.f32 %v519_v12  ;;  %v525_v28 = vmul.f32 1.442695, %v511_v43 }
  0x60   : > { %4465 = vst [vmem:[#allocation45_spill] sm:$0xff] %v2691_v20  ;;  %v2701_v40 = vmul.f32 %v2610_v29, %v2584_v56  ;;  %v515_v5 = vsub.f32 0.0, %v505_v11  ;;  %v516_v59 = vsub.f32 0.0, %v506_v49  ;;  %v527_v32 = vmul.f32 1.442695, %v512_v9 }
  0x61   : > { %4466 = vst [vmem:[#allocation46_spill] sm:$0xff] %v2694_v36  ;;  %v2704_v47 = vmul.f32 %v2627_v41, %v1777_v21  ;;  %v2708_v51 = vmul.f32 %v2613_v31, %v2589_v60  ;;  %1902 = vpow2.f32 %v521_v30  ;;  %v529_v14 = vmul.f32 1.442695, %v513_v25 }
  0x62   : > { %4467 = vst [vmem:[#allocation47_spill] sm:$0xff] %v2697_v10  ;;  %v2710_v24 = vmul.f32 %v1895_v46, %v1778_v23  ;;  %v2714_v12 = vmul.f32 %v2620_v34, %v2591_v61  ;;  %v2718_v15 = vmul.f32 %v2627_v41, %v2593_v62  ;;  %1904 = vpow2.f32 %v523_v54 }
  0x63   : > { %4468 = vst [vmem:[#allocation48_spill] sm:$0xff] %v2701_v40  ;;  %v2720_v9 = vmul.f32 %v1897_v53, %v1779_v13  ;;  %v2723_v56 = vmul.f32 %v1895_v46, %v2595_v63  ;;  %1906 = vpow2.f32 %v525_v28  ;;  %v531_v60 = vmul.f32 1.442695, %v514_v57 }
  0x64   : > { %4469 = vst [vmem:[#allocation49_spill] sm:$0xff] %v2704_v47  ;;  %v2725_v29 = vpop.eup %1898  ;;  %v2728_v23 = vmul.f32 %v1897_v53, %v2600_v19  ;;  %1908 = vpow2.f32 %v527_v32  ;;  %v533_v61 = vmul.f32 1.442695, %v515_v5  ;;  %v535_v31 = vmul.f32 1.442695, %v516_v59 }
  0x65   : > { %4470 = vst [vmem:[#allocation50_spill] sm:$0xff] %v2708_v51  ;;  %v2730_v34 = vpop.eup %1900  ;;  %1910 = vpow2.f32 %v529_v14  ;;  %v2742_v21 = vadd.f32 1.0, %v2725_v29  ;;  %v550_v37 = vmul.f32 -0.5, %v2725_v29  ;;  %v553_v57 = vand.u32 2147483647, %v2725_v29 }
  0x66   : > { %4471 = vst [vmem:[#allocation51_spill] sm:$0xff] %v2710_v24  ;;  %1912 = vpow2.f32 %v531_v60  ;;  %v559_v45 = vmul.f32 -0.5, %v2730_v34  ;;  %v2751_v25 = vadd.f32 1.0, %v2730_v34  ;;  %v562_v59 = vand.u32 2147483647, %v2730_v34 }
  0x67   : > { %4472 = vst [vmem:[#allocation52_spill] sm:$0xff] %v2714_v12  ;;  %v2739_v53 = vpop.eup %1902  ;;  %1914 = vpow2.f32 %v533_v61  ;;  %v551_v61 = vadd.f32 1.0, %v550_v37  ;;  %vm2795_vm0 = vcmp.lt.f32.partialorder %v553_v57, 0.0004427343  ;;  %vm662_vm10 = vweird.f32 %v2742_v21 }
  0x68   : > { %4473 = vst [vmem:[#allocation53_spill] sm:$0xff] %v2718_v15  ;;  %v2746_v43 = vpop.eup %1904  ;;  %1916 = vlog2.f32 %v2742_v21  ;;  %v568_v28 = vmul.f32 -0.5, %v2739_v53  ;;  %v2764_v32 = vadd.f32 1.0, %v2739_v53  ;;  %v560_v54 = vadd.f32 1.0, %v559_v45 }
  0x69   : > { %4474 = vst [vmem:[#allocation54_spill] sm:$0xff] %v2720_v9  ;;  %v2753_v30 = vpop.eup %1906  ;;  %1918 = vlog2.f32 %v2751_v25  ;;  %v577_v14 = vmul.f32 -0.5, %v2746_v43  ;;  %v2770_v49 = vadd.f32 1.0, %v2746_v43  ;;  %v571_v11 = vand.u32 2147483647, %v2739_v53 }
  0x6a   : > { %4475 = vst [vmem:[#allocation55_spill] sm:$0xff] %v2723_v56  ;;  %v2759_v5 = vpop.eup %1908  ;;  %1920 = vpow2.f32 %v535_v31  ;;  %v2775_v19 = vadd.f32 1.0, %v2753_v30  ;;  %v586_v58 = vmul.f32 -0.5, %v2753_v30  ;;  %v569_v41 = vadd.f32 1.0, %v568_v28 }
  0x6b   : > { %4476 = vst [vmem:[#allocation56_spill] sm:$0xff] %v2728_v23  ;;  %v2767_v60 = vpop.eup %1910  ;;  %1922 = vlog2.f32 %v2764_v32  ;;  %v580_v31 = vand.u32 2147483647, %v2746_v43  ;;  %v2783_v37 = vadd.f32 1.0, %v2759_v5  ;;  %v578_v63 = vadd.f32 1.0, %v577_v14 }
  0x6c   : > { %4477 = vst [vmem:[#allocation57_spill] sm:$0xff] %v2730_v34  ;;  %v2778_v46 = vpop.eup %1912  ;;  %1924 = vlog2.f32 %v2770_v49  ;;  %v589_v13 = vand.u32 2147483647, %v2753_v30  ;;  %v2790_v62 = vadd.f32 1.0, %v2767_v60  ;;  %v2793_v28 = vmul.f32 %v2725_v29, %v551_v61 }
  0x6d   : > { %4478 = vst [vmem:[#allocation58_spill] sm:$0xff] %v2739_v53  ;;  %v2785_v45 = vpop.eup %1914  ;;  %1926 = vlog2.f32 %v2775_v19  ;;  %vm2799_vm1 = vcmp.lt.f32.partialorder %v562_v59, 0.0004427343  ;;  %v595_v14 = vmul.f32 -0.5, %v2759_v5  ;;  %v2806_v1 = vmul.f32 %v2730_v34, %v560_v54 }
  0x6e   : > { %4479 = vst [vmem:[#allocation59_spill] sm:$0xff] %v2746_v43  ;;  %v1917_v7 = vpop.eup %1916  ;;  %1928 = vlog2.f32 %v2783_v37  ;;  %v587_v0 = vadd.f32 1.0, %v586_v58  ;;  %v604_v57 = vmul.f32 -0.5, %v2767_v60  ;;  %v2813_v59 = vmul.f32 %v2739_v53, %v569_v41 }
  0x6f   : > { %4480 = vst [vmem:[#allocation60_spill] sm:$0xff] %v2753_v30  ;;  %v1919_v2 = vpop.eup %1918  ;;  %1930 = vlog2.f32 %v2790_v62  ;;  %vm2815_vm2 = vcmp.lt.f32.partialorder %v571_v11, 0.0004427343  ;;  %v598_v56 = vand.u32 2147483647, %v2759_v5  ;;  %v2821_v15 = vadd.f32 1.0, %v2778_v46 }
  0x70   : > { %v2810_v61 = vpop.eup %1920  ;;  %v2824_v58 = vmul.f32 %v2746_v43, %v578_v63  ;;  %vm2826_vm3 = vcmp.lt.f32.partialorder %v580_v31, 0.0004427343  ;;  %vm2830_vm4 = vcmp.lt.f32.partialorder %v589_v13, 0.0004427343  ;;  %v2835_v11 = vadd.f32 1.0, %v2785_v45 }
  0x71   : > { %v1923_v54 = vpop.eup %1922  ;;  %v549_v40 = vmul.f32 0.6931472, %v1917_v7  ;;  %v558_v36 = vmul.f32 0.6931472, %v1919_v2  ;;  %v596_v20 = vadd.f32 1.0, %v595_v14  ;;  %1932 = vlog2.f32 %v2821_v15 }
  0x72   : > { %v1925_v51 = vpop.eup %1924  ;;  %v588_v63 = vmul.f32 %v2753_v30, %v587_v0  ;;  %v605_v31 = vadd.f32 1.0, %v604_v57  ;;  %v613_v44 = vmul.f32 -0.5, %v2778_v46  ;;  %1934 = vlog2.f32 %v2835_v11 }
  0x73   : > { %v1927_v52 = vpop.eup %1926  ;;  %v567_v9 = vmul.f32 0.6931472, %v1923_v54  ;;  %vm2841_vm5 = vcmp.lt.f32.partialorder %v598_v56, 0.0004427343  ;;  %v622_v7 = vmul.f32 -0.5, %v2785_v45  ;;  %1936 = vrcp.f32 %v2742_v21 }
  0x74   : > { %v1929_v13 = vpop.eup %1928  ;;  %v576_v14 = vmul.f32 0.6931472, %v1925_v51  ;;  %v607_v47 = vand.u32 2147483647, %v2767_v60  ;;  %v2849_v0 = vadd.f32 1.0, %v2810_v61  ;;  %1938 = vrcp.f32 %v2751_v25 }
  0x75   : > { %v1931_v2 = vpop.eup %1930  ;;  %v585_v57 = vmul.f32 0.6931472, %v1927_v52  ;;  %v597_v54 = vmul.f32 %v2759_v5, %v596_v20  ;;  %v616_v56 = vand.u32 2147483647, %v2778_v46  ;;  %v631_v10 = vmul.f32 -0.5, %v2810_v61 }
  0x76   : > { %v594_v30 = vmul.f32 0.6931472, %v1929_v13  ;;  %v606_v50 = vmul.f32 %v2767_v60, %v605_v31  ;;  %v614_v43 = vadd.f32 1.0, %v613_v44  ;;  %1940 = vlog2.f32 %v2849_v0 }
  0x77   : > { %v1933_v51 = vpop.eup %1932  ;;  %v603_v17 = vmul.f32 0.6931472, %v1931_v2  ;;  %v623_v53 = vadd.f32 1.0, %v622_v7  ;;  %v625_v34 = vand.u32 2147483647, %v2785_v45  ;;  %1942 = vrcp.f32 %v2764_v32 }
  0x78   : > { %v1935_v52 = vpop.eup %1934  ;;  %v555_v20 = vsel %vm2795_vm0, %v2793_v28, %v549_v40  ;;  %v564_v13 = vsel %vm2799_vm1, %v2806_v1, %v558_v36  ;;  %v573_v44 = vsel %vm2815_vm2, %v2813_v59, %v567_v9  ;;  %vm2868_vm6 = vcmp.lt.f32.partialorder %v607_v47, 0.0004427343 }
  0x79   : > { %v2872_v7 = vpop.eup %1936  ;;  %v582_v2 = vsel %vm2826_vm3, %v2824_v58, %v576_v14  ;;  %vm2877_vm7 = vcmp.lt.f32.partialorder %v616_v56, 0.0004427343  ;;  %v632_v4 = vadd.f32 1.0, %v631_v10  ;;  %1944 = vrcp.f32 %v2770_v49 }
  0x7a   : > { %v2882_v1 = vpop.eup %1938  ;;  %v591_v36 = vsel %vm2830_vm4, %v588_v63, %v585_v57  ;;  %v600_v40 = vsel %vm2841_vm5, %v597_v54, %v594_v30  ;;  %v615_v47 = vmul.f32 %v2778_v46, %v614_v43  ;;  %v634_v12 = vand.u32 2147483647, %v2810_v61 }
  0x7b   : > { %v609_v9 = vsel %vm2868_vm6, %v606_v50, %v603_v17  ;;  %v624_v23 = vmul.f32 %v2785_v45, %v623_v53  ;;  %vm2893_vm8 = vcmp.lt.f32.partialorder %v625_v34, 0.0004427343  ;;  %v4499_v28 = vmax.f32 %v2604_v22, 0.0 }
  0x7c   : > { %v1941_v58 = vpop.eup %1940  ;;  %v612_v24 = vmul.f32 0.6931472, %v1933_v51  ;;  %v621_v30 = vmul.f32 0.6931472, %v1935_v52  ;;  %v4501_v43 = vmax.f32 %v2608_v26, 0.0  ;;  %1946 = vrcp.f32 %v2775_v19 }
  0x7d   : > { %v2899_v59 = vadd.f32 %v555_v20, %v4499_v28  ;;  %v2906_v17 = vpop.eup %1942  ;;  %v633_v50 = vmul.f32 %v2810_v61, %v632_v4  ;;  %v4503_v34 = vmax.f32 %v2618_v33, 0.0  ;;  %v658_v63 = vmul.f32 %v2872_v7, %v2742_v21 }
  0x7e   : > { %v2903_v41 = vadd.f32 %v564_v13, %v4501_v43  ;;  %v673_v14 = vmul.f32 %v2882_v1, %v2751_v25  ;;  %vm2917_vm9 = vcmp.lt.f32.partialorder %v634_v12, 0.0004427343  ;;  %v4507_v54 = vmax.f32 %v2624_v38, 0.0 }
  0x7f   : > { %4500 = vst [vmem:[#allocation61_spill] sm:$0xff] %v2899_v59  ;;  %v2911_v53 = vadd.f32 %v573_v44, %v4503_v34  ;;  %v4509_v51 = vmax.f32 %v2630_v42, 0.0  ;;  %v4511_v20 = vmax.f32 %v2636_v48, 0.0  ;;  %v2933_v44 = vpop.eup %1944  ;;  %v630_v31 = vmul.f32 0.6931472, %v1941_v58 }
  0x80   : > { %4502 = vst [vmem:[#allocation62_spill] sm:$0xff] %v2903_v41  ;;  %v2923_v56 = vadd.f32 %v582_v2, %v4507_v54  ;;  %v4513_v4 = vmax.f32 %v2642_v55, 0.0  ;;  %v668_v28 = vand.u32 2147483648, %v2742_v21  ;;  %1948 = vrcp.f32 %v2783_v37 }
  0x81   : > { %4504 = vst [vmem:[#allocation63_spill] sm:$0xff] %v2911_v53  ;;  %v2927_v52 = vadd.f32 %v591_v36, %v4509_v51  ;;  %v2931_v13 = vadd.f32 %v600_v40, %v4511_v20  ;;  %v618_v2 = vsel %vm2877_vm7, %v615_v47, %v612_v24  ;;  %v627_v36 = vsel %vm2893_vm8, %v624_v23, %v621_v30 }
  0x82   : > { %4508 = vst [vmem:[#allocation64_spill] sm:$0xff] %v2923_v56  ;;  %v2937_v12 = vadd.f32 %v609_v9, %v4513_v4  ;;  %v683_v40 = vand.u32 2147483648, %v2751_v25  ;;  %v688_v43 = vmul.f32 %v2906_v17, %v2764_v32  ;;  %v659_v58 = vsub.f32 1.0, %v658_v63  ;;  %v2950_v51 = vpop.eup %1946 }
  0x83   : > { %4510 = vst [vmem:[#allocation65_spill] sm:$0xff] %v2927_v52  ;;  %v666_v34 = vand.u32 2147483647, %v2742_v21  ;;  %v674_v9 = vsub.f32 1.0, %v673_v14  ;;  %v681_v54 = vand.u32 2147483647, %v2751_v25  ;;  %vm677_vm11 = vweird.f32 %v2751_v25 }
  0x84   : > { %4512 = vst [vmem:[#allocation66_spill] sm:$0xff] %v2931_v13  ;;  %v703_v6 = vmul.f32 %v2933_v44, %v2770_v49  ;;  %1950 = vrcp.f32 %v2790_v62  ;;  %v636_v47 = vsel %vm2917_vm9, %v633_v50, %v630_v31  ;;  %v4515_v23 = vmax.f32 %v2650_v27, 0.0 }
  0x85   : > { %4514 = vst [vmem:[#allocation67_spill] sm:$0xff] %v2937_v12  ;;  %v4517_v24 = vmax.f32 %v2654_v18, 0.0  ;;  %v669_v63 = vor.u32 1.1754944e-38, %v668_v28  ;;  %v684_v14 = vor.u32 1.1754944e-38, %v683_v40  ;;  %v689_v20 = vsub.f32 1.0, %v688_v43 }
  0x86   : > { %v2961_v10 = vadd.f32 %v618_v2, %v4515_v23  ;;  %v696_v4 = vand.u32 2147483647, %v2764_v32  ;;  %v698_v12 = vand.u32 2147483648, %v2764_v32  ;;  %v2969_v13 = vpop.eup %1948  ;;  %v660_v57 = vmul.f32 %v2872_v7, %v659_v58 }
  0x87   : > { %v2965_v30 = vadd.f32 %v627_v36, %v4517_v24  ;;  %vm2972_vm12 = vcmp.eq.f32.partialorder %v666_v34, 8.507059e+37  ;;  %v675_v31 = vmul.f32 %v2882_v1, %v674_v9  ;;  %vm2977_vm13 = vcmp.eq.f32.partialorder %v681_v54, 8.507059e+37 }
  0x88   : > { %4516 = vst [vmem:[#allocation68_spill] sm:$0xff] %v2961_v10  ;;  %vm692_vm14 = vweird.f32 %v2764_v32  ;;  %v718_v28 = vmul.f32 %v2950_v51, %v2775_v19  ;;  %v4523_v36 = vmax.f32 %v2656_v16, 0.0  ;;  %vm663_vm15 = vweird.f32 %v2872_v7 }
  0x89   : > { %4518 = vst [vmem:[#allocation69_spill] sm:$0xff] %v2965_v30  ;;  %v704_v43 = vsub.f32 1.0, %v703_v6  ;;  %vm707_vm0 = vweird.f32 %v2770_v49  ;;  %vm678_vm1 = vweird.f32 %v2882_v1  ;;  %v711_v58 = vand.u32 2147483647, %v2770_v49  ;;  %vm3007_vm4 = vmor %vm662_vm10, %vm663_vm15 }
  0x8a   : > { %v2986_v40 = vadd.f32 %v636_v47, %v4523_v36  ;;  %v713_v34 = vand.u32 2147483648, %v2770_v49  ;;  %v733_v9 = vmul.f32 %v2969_v13, %v2783_v37  ;;  %v2995_v54 = vpop.eup %1950  ;;  %v690_v23 = vmul.f32 %v2906_v17, %v689_v20  ;;  %vm3017_vm5 = vmor %vm677_vm11, %vm678_vm1 }
  0x8b   : > { %vm2998_vm2 = vcmp.eq.f32.partialorder %v696_v4, 8.507059e+37  ;;  %v699_v6 = vor.u32 1.1754944e-38, %v698_v12  ;;  %vm722_vm3 = vweird.f32 %v2775_v19  ;;  %1952 = vrcp.f32 %v2821_v15 }
  0x8c   : > { %4524 = vst [vmem:[#allocation70_spill] sm:$0xff] %v2986_v40  ;;  %v661_v24 = vadd.f32 %v2872_v7, %v660_v57  ;;  %v676_v40 = vadd.f32 %v2882_v1, %v675_v31  ;;  %v719_v20 = vsub.f32 1.0, %v718_v28  ;;  %v726_v4 = vand.u32 2147483647, %v2775_v19 }
  0x8d   : > { %vm693_vm6 = vweird.f32 %v2906_v17  ;;  %v705_v21 = vmul.f32 %v2933_v44, %v704_v43  ;;  %v728_v57 = vand.u32 2147483648, %v2775_v19  ;;  %v748_v31 = vmul.f32 %v2995_v54, %v2790_v62 }
  0x8e   : > { %vm3026_vm7 = vcmp.eq.f32.partialorder %v711_v58, 8.507059e+37  ;;  %v714_v30 = vor.u32 1.1754944e-38, %v713_v34  ;;  %v734_v10 = vsub.f32 1.0, %v733_v9  ;;  %1954 = vrcp.f32 %v2835_v11  ;;  %vm3043_vm9 = vmor %vm692_vm14, %vm693_vm6 }
  0x8f   : > { %v691_v25 = vadd.f32 %v2906_v17, %v690_v23  ;;  %vm708_vm8 = vweird.f32 %v2933_v44  ;;  %v741_v52 = vand.u32 2147483647, %v2783_v37  ;;  %v743_v43 = vand.u32 2147483648, %v2783_v37 }
  0x90   : > { %v665_v56 = vsel %vm3007_vm4, %v2872_v7, %v661_v24  ;;  %v680_v58 = vsel %vm3017_vm5, %v2882_v1, %v676_v40  ;;  %v720_v9 = vmul.f32 %v2950_v51, %v719_v20  ;;  %vm3048_vm10 = vcmp.eq.f32.partialorder %v726_v4, 8.507059e+37  ;;  %vm3059_vm14 = vmor %vm707_vm0, %vm708_vm8 }
  0x91   : > { %1956 = vrcp.f32 %v2849_v0  ;;  %v3053_v36 = vpop.eup %1952  ;;  %v706_v7 = vadd.f32 %v2933_v44, %v705_v21  ;;  %v729_v24 = vor.u32 1.1754944e-38, %v728_v57  ;;  %vm737_vm11 = vweird.f32 %v2783_v37 }
  0x92   : > { %v749_v32 = vsub.f32 1.0, %v748_v31  ;;  %vm723_vm15 = vweird.f32 %v2950_v51  ;;  %v735_v40 = vmul.f32 %v2969_v13, %v734_v10  ;;  %v756_v20 = vand.u32 2147483647, %v2790_v62 }
  0x93   : > { %v763_v4 = vmul.f32 %v3053_v36, %v2821_v15  ;;  %v3070_v12 = vsel %vm2972_vm12, %v669_v63, %v665_v56  ;;  %v3074_v49 = vsel %vm2977_vm13, %v684_v14, %v680_v58  ;;  %v695_v21 = vsel %vm3043_vm9, %v2906_v17, %v691_v25  ;;  %vm3093_vm13 = vmor %vm722_vm3, %vm723_vm15 }
  0x94   : > { %vm3079_vm0 = vcmp.eq.f32.partialorder %v741_v52, 8.507059e+37  ;;  %v3083_v10 = vpop.eup %1954  ;;  %v721_v31 = vadd.f32 %v2950_v51, %v720_v9  ;;  %vm738_vm1 = vweird.f32 %v2969_v13  ;;  %v744_v56 = vor.u32 1.1754944e-38, %v743_v43 }
  0x95   : > { %vm752_vm12 = vweird.f32 %v2790_v62  ;;  %v710_v63 = vsel %vm3059_vm14, %v2933_v44, %v706_v7  ;;  %v750_v52 = vmul.f32 %v2995_v54, %v749_v32  ;;  %v758_v14 = vand.u32 2147483648, %v2790_v62  ;;  %vm3114_vm3 = vmor %vm737_vm11, %vm738_vm1 }
  0x96   : > { %v778_v50 = vmul.f32 %v3083_v10, %v2835_v11  ;;  %v3105_v25 = vsel %vm2998_vm2, %v699_v6, %v695_v21  ;;  %v736_v44 = vadd.f32 %v2969_v13, %v735_v40  ;;  %vm3108_vm4 = vcmp.eq.f32.partialorder %v756_v20, 8.507059e+37 }
  0x97   : > { %v3101_v2 = vpop.eup %1956  ;;  %v764_v43 = vsub.f32 1.0, %v763_v4  ;;  %vm753_vm5 = vweird.f32 %v2995_v54  ;;  %vm767_vm6 = vweird.f32 %v2821_v15  ;;  %v771_v47 = vand.u32 2147483647, %v2821_v15 }
  0x98   : > { %v793_v6 = vmul.f32 %v3101_v2, %v2849_v0  ;;  %v3125_v34 = vsel %vm3026_vm7, %v714_v30, %v710_v63  ;;  %v725_v37 = vsel %vm3093_vm13, %v2950_v51, %v721_v31  ;;  %v773_v9 = vand.u32 2147483648, %v2821_v15  ;;  %vm3138_vm2 = vmor %vm752_vm12, %vm753_vm5 }
  0x99   : > { %v779_v7 = vsub.f32 1.0, %v778_v50  ;;  %v751_v32 = vadd.f32 %v2995_v54, %v750_v52  ;;  %v759_v1 = vor.u32 1.1754944e-38, %v758_v14  ;;  %v786_v40 = vand.u32 2147483647, %v2835_v11 }
  0x9a   : > { %v794_v20 = vsub.f32 1.0, %v793_v6  ;;  %v740_v4 = vsel %vm3114_vm3, %v2969_v13, %v736_v44  ;;  %v765_v51 = vmul.f32 %v3053_v36, %v764_v43  ;;  %v788_v28 = vand.u32 2147483648, %v2835_v11 }
  0x9b   : > { %v801_v21 = vand.u32 2147483647, %v2849_v0  ;;  %v3147_v31 = vsel %vm3048_vm10, %v729_v24, %v725_v37  ;;  %vm3149_vm7 = vcmp.eq.f32.partialorder %v771_v47, 8.507059e+37  ;;  %vm782_vm8 = vweird.f32 %v2835_v11  ;;  %v4569_v37 = vld [vmem:[#allocation51_spill] sm:$0xff] }
  0x9c   : > { %v803_v62 = vand.u32 2147483648, %v2849_v0  ;;  %vm768_vm9 = vweird.f32 %v3053_v36  ;;  %v774_v13 = vor.u32 1.1754944e-38, %v773_v9  ;;  %v780_v17 = vmul.f32 %v3083_v10, %v779_v7 }
  0x9d   : > { %vm797_vm11 = vweird.f32 %v2849_v0  ;;  %v3160_v23 = vsel %vm3079_vm0, %v744_v56, %v740_v4  ;;  %v755_v24 = vsel %vm3138_vm2, %v2995_v54, %v751_v32  ;;  %vm3165_vm10 = vcmp.eq.f32.partialorder %v786_v40, 8.507059e+37  ;;  %vm3178_vm0 = vmor %vm767_vm6, %vm768_vm9  ;;  %v4562_v40 = vld [vmem:[#allocation58_spill] sm:$0xff]  ;;  %v4563_v4 = vld [vmem:[#allocation41_spill] sm:$0xff] }
  0x9e   : > { %v795_v14 = vmul.f32 %v3101_v2, %v794_v20  ;;  %v766_v50 = vadd.f32 %v3053_v36, %v765_v51  ;;  %vm783_vm14 = vweird.f32 %v3083_v10  ;;  %v789_v44 = vor.u32 1.1754944e-38, %v788_v28  ;;  %v4564_v0 = vld [vmem:[#allocation59_spill] sm:$0xff] }
  0x9f   : > { %vm3172_vm15 = vcmp.eq.f32.partialorder %v801_v21, 8.507059e+37  ;;  %vm798_vm1 = vweird.f32 %v3101_v2  ;;  %v804_v54 = vor.u32 1.1754944e-38, %v803_v62  ;;  %vm807_vm12 = vcmp.ge.f32.partialorder %v2604_v22, 0.0  ;;  %vm3194_vm13 = vmor %vm782_vm8, %vm783_vm14  ;;  %v4565_v51 = vld [vmem:[#allocation43_spill] sm:$0xff] }
  0xa0   : > { %v837_v56 = vand.u32 2147483647, %v2661_v8  ;;  %v3187_v58 = vsel %vm3108_vm4, %v759_v1, %v755_v24  ;;  %v781_v47 = vadd.f32 %v3083_v10, %v780_v17  ;;  %v838_v6 = vand.u32 2147483647, %v2664_v39  ;;  %vm3211_vm4 = vmor %vm797_vm11, %vm798_vm1  ;;  %v4566_v24 = vld [vmem:[#allocation60_spill] sm:$0xff] }
  0xa1   : > { %v839_v15 = vand.u32 2147483647, %v2668_v3  ;;  %v796_v9 = vadd.f32 %v3101_v2, %v795_v14  ;;  %vm808_vm3 = vcmp.ge.f32.partialorder %v2608_v26, 0.0  ;;  %vm809_vm5 = vcmp.ge.f32.partialorder %v2618_v33, 0.0 }
  0xa2   : > { %v817_v19 = vmul.f32 %v2725_v29, %v3070_v12  ;;  %v840_v7 = vand.u32 2147483647, %v2670_v35  ;;  %v770_v32 = vsel %vm3178_vm0, %v3053_v36, %v766_v50  ;;  %vm810_vm6 = vcmp.ge.f32.partialorder %v2624_v38, 0.0  ;;  %v4561_v29 = vld [vmem:[#allocation57_spill] sm:$0xff]  ;;  %v4567_v50 = vld [vmem:[#allocation47_spill] sm:$0xff] }
  0xa3   : > { %vm811_vm2 = vcmp.ge.f32.partialorder %v2630_v42, 0.0  ;;  %v818_v1 = vmul.f32 %v4561_v29, %v3074_v49  ;;  %v819_v20 = vmul.f32 %v4562_v40, %v3105_v25  ;;  %v841_v36 = vand.u32 2147483647, %v4563_v4 }
  0xa4   : > { %vm812_vm8 = vcmp.ge.f32.partialorder %v2636_v48, 0.0  ;;  %vm813_vm9 = vcmp.ge.f32.partialorder %v2642_v55, 0.0  ;;  %v820_v30 = vmul.f32 %v4564_v0, %v3125_v34  ;;  %v842_v28 = vand.u32 2147483647, %v4565_v51 }
  0xa5   : > { %v847_v21 = vsub.f32 0.0, %v837_v56  ;;  %v848_v62 = vsub.f32 0.0, %v838_v6  ;;  %v785_v17 = vsel %vm3194_vm13, %v3083_v10, %v781_v47  ;;  %vm814_vm11 = vcmp.ge.f32.partialorder %v2650_v27, 0.0  ;;  %v4568_v6 = vld [vmem:[#allocation49_spill] sm:$0xff] }
  0xa6   : > { %vm815_vm14 = vcmp.ge.f32.partialorder %v2654_v18, 0.0  ;;  %vm816_vm0 = vcmp.ge.f32.partialorder %v2656_v16, 0.0  ;;  %v821_v14 = vmul.f32 %v4566_v24, %v3147_v31  ;;  %v843_v57 = vand.u32 2147483647, %v4567_v50 }
  0xa7   : > { %v849_v29 = vsub.f32 0.0, %v839_v15  ;;  %v800_v56 = vsel %vm3211_vm4, %v3101_v2, %v796_v9  ;;  %v844_v40 = vand.u32 2147483647, %v4568_v6  ;;  %v845_v10 = vand.u32 2147483647, %v4569_v37  ;;  %v4570_v9 = vld [vmem:[#allocation54_spill] sm:$0xff] }
  0xa8   : > { %v850_v47 = vsub.f32 0.0, %v840_v7  ;;  %v775_v0 = vsel %vm3149_vm7, %v774_v13, %v770_v32  ;;  %v851_v53 = vsub.f32 0.0, %v841_v36  ;;  %v857_v41 = vmul.f32 1.442695, %v847_v21 }
  0xa9   : > { %v859_v59 = vmul.f32 1.442695, %v848_v62  ;;  %v790_v24 = vsel %vm3165_vm10, %v789_v44, %v785_v17  ;;  %v822_v15 = vmul.f32 %v2759_v5, %v3160_v23  ;;  %v852_v50 = vsub.f32 0.0, %v842_v28 }
  0xaa   : > { %v861_v11 = vmul.f32 1.442695, %v849_v29  ;;  %v805_v2 = vsel %vm3172_vm15, %v804_v54, %v800_v56  ;;  %v846_v37 = vand.u32 2147483647, %v4570_v9  ;;  %v853_v7 = vsub.f32 0.0, %v843_v57 }
  0xab   : > { %1958 = vpow2.f32 %v857_v41  ;;  %v823_v63 = vmul.f32 %v2767_v60, %v3187_v58  ;;  %v824_v13 = vmul.f32 %v2778_v46, %v775_v0  ;;  %v854_v32 = vsub.f32 0.0, %v844_v40 }
  0xac   : > { %v863_v52 = vmul.f32 1.442695, %v850_v47  ;;  %v3256_v5 = vsel %vm807_vm12, %v3070_v12, %v817_v19  ;;  %v855_v44 = vsub.f32 0.0, %v845_v10  ;;  %1960 = vpow2.f32 %v859_v59 }
  0xad   : > { %4571 = vst [vmem:[#allocation57_spill] sm:$0xff] %v3256_v5  ;;  %v865_v43 = vmul.f32 1.442695, %v851_v53  ;;  %v825_v54 = vmul.f32 %v2785_v45, %v790_v24  ;;  %v826_v36 = vmul.f32 %v2810_v61, %v805_v2  ;;  %1962 = vpow2.f32 %v861_v11 }
  0xae   : > { %v867_v41 = vmul.f32 1.442695, %v852_v50  ;;  %v3263_v46 = vsel %vm808_vm3, %v3074_v49, %v818_v1  ;;  %v3268_v60 = vsel %vm809_vm5, %v3105_v25, %v819_v20  ;;  %v856_v12 = vsub.f32 0.0, %v846_v37 }
  0xaf   : > { %4572 = vst [vmem:[#allocation58_spill] sm:$0xff] %v3263_v46  ;;  %v869_v19 = vmul.f32 1.442695, %v853_v7  ;;  %v3273_v45 = vsel %vm810_vm6, %v3125_v34, %v820_v30  ;;  %v3278_v61 = vsel %vm811_vm2, %v3147_v31, %v821_v14  ;;  %1964 = vpow2.f32 %v863_v52  ;;  %v4582_v52 = vld [vmem:[#allocation51_spill] sm:$0xff] }
  0xb0   : > { %4573 = vst [vmem:[#allocation41_spill] sm:$0xff] %v3268_v60  ;;  %v871_v59 = vmul.f32 1.442695, %v854_v32  ;;  %v3285_v49 = vsel %vm812_vm8, %v3160_v23, %v822_v15  ;;  %v3290_v25 = vsel %vm813_vm9, %v3187_v58, %v823_v63  ;;  %1966 = vpow2.f32 %v865_v43 }
  0xb1   : > { %4574 = vst [vmem:[#allocation59_spill] sm:$0xff] %v3273_v45  ;;  %v3280_v53 = vpop.eup %1958  ;;  %v873_v34 = vmul.f32 1.442695, %v855_v44  ;;  %v3294_v31 = vsel %vm814_vm11, %v775_v0, %v824_v13  ;;  %v3298_v1 = vsel %vm815_vm14, %v790_v24, %v825_v54  ;;  %v3302_v20 = vsel %vm816_vm0, %v805_v2, %v826_v36  ;;  %v4581_v0 = vld [vmem:[#allocation47_spill] sm:$0xff] }
  0xb2   : > { %4575 = vst [vmem:[#allocation43_spill] sm:$0xff] %v3278_v61  ;;  %1968 = vpow2.f32 %v867_v41  ;;  %v3304_v23 = vpop.eup %1960  ;;  %v875_v58 = vmul.f32 1.442695, %v856_v12  ;;  %v3313_v14 = vadd.f32 1.0, %v3280_v53  ;;  %v890_v29 = vmul.f32 -0.5, %v3280_v53 }
  0xb3   : > { %4576 = vst [vmem:[#allocation60_spill] sm:$0xff] %v3285_v49  ;;  %1970 = vpow2.f32 %v869_v19  ;;  %v3308_v21 = vpop.eup %1962  ;;  %v893_v40 = vand.u32 2147483647, %v3280_v53  ;;  %v3323_v37 = vadd.f32 1.0, %v3304_v23  ;;  %v899_v10 = vmul.f32 -0.5, %v3304_v23 }
  0xb4   : > { %4577 = vst [vmem:[#allocation49_spill] sm:$0xff] %v3290_v25  ;;  %1972 = vpow2.f32 %v871_v59  ;;  %v902_v15 = vand.u32 2147483647, %v3304_v23  ;;  %v3331_v11 = vadd.f32 1.0, %v3308_v21  ;;  %v908_v63 = vmul.f32 -0.5, %v3308_v21 }
  0xb5   : > { %4578 = vst [vmem:[#allocation54_spill] sm:$0xff] %v3294_v31  ;;  %1974 = vpow2.f32 %v873_v34  ;;  %v3318_v56 = vpop.eup %1964  ;;  %v891_v41 = vadd.f32 1.0, %v890_v29  ;;  %vm3349_vm7 = vcmp.lt.f32.partialorder %v893_v40, 0.0004427343  ;;  %v900_v19 = vadd.f32 1.0, %v899_v10 }
  0xb6   : > { %4579 = vst [vmem:[#allocation71_spill] sm:$0xff] %v3298_v1  ;;  %1976 = vlog2.f32 %v3313_v14  ;;  %v3326_v47 = vpop.eup %1966  ;;  %v917_v13 = vmul.f32 -0.5, %v3318_v56  ;;  %v3345_v54 = vadd.f32 1.0, %v3318_v56  ;;  %v911_v59 = vand.u32 2147483647, %v3308_v21 }
  0xb7   : > { %4580 = vst [vmem:[#allocation72_spill] sm:$0xff] %v3302_v20  ;;  %1978 = vpow2.f32 %v875_v58  ;;  %vm3356_vm10 = vcmp.lt.f32.partialorder %v902_v15, 0.0004427343  ;;  %v3362_v43 = vadd.f32 1.0, %v3326_v47  ;;  %v926_v29 = vmul.f32 -0.5, %v3326_v47 }
  0xb8   : > { %v3333_v2 = vpop.eup %1968  ;;  %1980 = vlog2.f32 %v3323_v37  ;;  %v909_v44 = vadd.f32 1.0, %v908_v63  ;;  %v918_v7 = vadd.f32 1.0, %v917_v13  ;;  %v920_v10 = vand.u32 2147483647, %v3318_v56 }
  0xb9   : > { %v3339_v32 = vpop.eup %1970  ;;  %1982 = vlog2.f32 %v3331_v11  ;;  %v3367_v24 = vadd.f32 1.0, %v3333_v2  ;;  %v929_v15 = vand.u32 2147483647, %v3326_v47  ;;  %v935_v50 = vmul.f32 -0.5, %v3333_v2 }
  0xba   : > { %v3347_v36 = vpop.eup %1972  ;;  %1984 = vlog2.f32 %v3345_v54  ;;  %v3375_v17 = vadd.f32 1.0, %v3339_v32  ;;  %v3378_v63 = vmul.f32 %v3280_v53, %v891_v41  ;;  %v3381_v13 = vmul.f32 %v3304_v23, %v900_v19 }
  0xbb   : > { %v3354_v34 = vpop.eup %1974  ;;  %1986 = vlog2.f32 %v3362_v43  ;;  %vm3383_vm15 = vcmp.lt.f32.partialorder %v911_v59, 0.0004427343  ;;  %v927_v18 = vadd.f32 1.0, %v926_v29  ;;  %v938_v20 = vand.u32 2147483647, %v3333_v2 }
  0xbc   : > { %v1977_v40 = vpop.eup %1976  ;;  %1988 = vlog2.f32 %v3367_v24  ;;  %v910_v1 = vmul.f32 %v3308_v21, %v909_v44  ;;  %vm3391_vm1 = vcmp.lt.f32.partialorder %v920_v10, 0.0004427343  ;;  %v944_v19 = vmul.f32 -0.5, %v3339_v32 }
  0xbd   : > { %v3369_v57 = vpop.eup %1978  ;;  %v889_v16 = vmul.f32 0.6931472, %v1977_v40  ;;  %1990 = vlog2.f32 %v3375_v17  ;;  %v3397_v59 = vadd.f32 1.0, %v3347_v36  ;;  %v919_v40 = vmul.f32 %v3318_v56, %v918_v7 }
  0xbe   : > { %v1981_v62 = vpop.eup %1980  ;;  %vm3400_vm12 = vcmp.lt.f32.partialorder %v929_v15, 0.0004427343  ;;  %v936_v49 = vadd.f32 1.0, %v935_v50  ;;  %v953_v44 = vmul.f32 -0.5, %v3347_v36  ;;  %v3407_v10 = vadd.f32 1.0, %v3354_v34 }
  0xbf   : > { %v1983_v30 = vpop.eup %1982  ;;  %v898_v25 = vmul.f32 0.6931472, %v1981_v62  ;;  %1992 = vlog2.f32 %v3397_v59  ;;  %v895_v62 = vsel %vm3349_vm7, %v3378_v63, %v889_v16  ;;  %v928_v7 = vmul.f32 %v3326_v47, %v927_v18 }
  0xc0   : > { %v1985_v31 = vpop.eup %1984  ;;  %v907_v61 = vmul.f32 0.6931472, %v1983_v30  ;;  %vm3413_vm13 = vcmp.lt.f32.partialorder %v938_v20, 0.0004427343  ;;  %v962_v30 = vmul.f32 -0.5, %v3354_v34  ;;  %v945_v46 = vadd.f32 1.0, %v944_v19 }
  0xc1   : > { %v1987_v45 = vpop.eup %1986  ;;  %v916_v60 = vmul.f32 0.6931472, %v1985_v31  ;;  %v947_v5 = vand.u32 2147483647, %v3339_v32  ;;  %1994 = vlog2.f32 %v3407_v10  ;;  %v937_v55 = vmul.f32 %v3333_v2, %v936_v49 }
  0xc2   : > { %v1989_v50 = vpop.eup %1988  ;;  %v956_v16 = vand.u32 2147483647, %v3347_v36  ;;  %v3423_v18 = vadd.f32 1.0, %v3369_v57  ;;  %v971_v20 = vmul.f32 -0.5, %v3369_v57  ;;  %v904_v12 = vsel %vm3356_vm10, %v3381_v13, %v898_v25 }
  0xc3   : > { %v1991_v27 = vpop.eup %1990  ;;  %v913_v31 = vsel %vm3383_vm15, %v910_v1, %v907_v61  ;;  %v925_v63 = vmul.f32 0.6931472, %v1987_v45  ;;  %v954_v19 = vadd.f32 1.0, %v953_v44  ;;  %v934_v48 = vmul.f32 0.6931472, %v1989_v50 }
  0xc4   : > { %v963_v42 = vadd.f32 1.0, %v962_v30  ;;  %v965_v49 = vand.u32 2147483647, %v3354_v34  ;;  %1996 = vlog2.f32 %v3423_v18  ;;  %v922_v33 = vsel %vm3391_vm1, %v919_v40, %v916_v60 }
  0xc5   : > { %v1993_v38 = vpop.eup %1992  ;;  %v943_v26 = vmul.f32 0.6931472, %v1991_v27  ;;  %v946_v22 = vmul.f32 %v3339_v32, %v945_v46  ;;  %vm3436_vm3 = vcmp.lt.f32.partialorder %v947_v5, 0.0004427343  ;;  %vm3440_vm5 = vcmp.lt.f32.partialorder %v956_v16, 0.0004427343 }
  0xc6   : > { %v972_v61 = vadd.f32 1.0, %v971_v20  ;;  %v974_v1 = vand.u32 2147483647, %v3369_v57  ;;  %1998 = vrcp.f32 %v3313_v14  ;;  %v931_v60 = vsel %vm3400_vm12, %v928_v7, %v925_v63 }
  0xc7   : > { %v1995_v28 = vpop.eup %1994  ;;  %v952_v27 = vmul.f32 0.6931472, %v1993_v38  ;;  %v955_v46 = vmul.f32 %v3347_v36, %v954_v19  ;;  %2000 = vrcp.f32 %v3323_v37  ;;  %v940_v5 = vsel %vm3413_vm13, %v937_v55, %v934_v48 }
  0xc8   : > { %v961_v58 = vmul.f32 0.6931472, %v1995_v28  ;;  %v964_v13 = vmul.f32 %v3354_v34, %v963_v42  ;;  %vm3453_vm4 = vcmp.lt.f32.partialorder %v965_v49, 0.0004427343  ;;  %v949_v40 = vsel %vm3436_vm3, %v946_v22, %v943_v26 }
  0xc9   : > { %v4601_v29 = vmax.f32 %v2661_v8, 0.0  ;;  %v4603_v44 = vmax.f32 %v2664_v39, 0.0  ;;  %v4605_v48 = vmax.f32 %v2668_v3, 0.0  ;;  %v973_v15 = vmul.f32 %v3369_v57, %v972_v61 }
  0xca   : > { %v1997_v42 = vpop.eup %1996  ;;  %vm3472_vm6 = vcmp.lt.f32.partialorder %v974_v1, 0.0004427343  ;;  %v4609_v22 = vmax.f32 %v2670_v35, 0.0  ;;  %2002 = vrcp.f32 %v3331_v11  ;;  %v4611_v50 = vmax.f32 %v4563_v4, 0.0 }
  0xcb   : > { %v3461_v38 = vadd.f32 %v895_v62, %v4601_v29  ;;  %v3465_v7 = vadd.f32 %v904_v12, %v4603_v44  ;;  %v3469_v55 = vadd.f32 %v913_v31, %v4605_v48  ;;  %v958_v62 = vsel %vm3440_vm5, %v955_v46, %v952_v27 }
  0xcc   : > { %v3478_v26 = vadd.f32 %v922_v33, %v4609_v22  ;;  %v3485_v16 = vadd.f32 %v931_v60, %v4611_v50  ;;  %v4613_v20 = vmax.f32 %v4565_v51, 0.0  ;;  %v1008_v31 = vand.u32 2147483648, %v3313_v14  ;;  %v3492_v63 = vpop.eup %1998 }
  0xcd   : > { %4602 = vst [vmem:[#allocation47_spill] sm:$0xff] %v3461_v38  ;;  %v967_v33 = vsel %vm3453_vm4, %v964_v13, %v961_v58  ;;  %v1006_v19 = vand.u32 2147483647, %v3313_v14  ;;  %v1023_v49 = vand.u32 2147483648, %v3323_v37  ;;  %2004 = vrcp.f32 %v3345_v54  ;;  %v3499_v25 = vpop.eup %2000 }
  0xce   : > { %4604 = vst [vmem:[#allocation51_spill] sm:$0xff] %v3465_v7  ;;  %v3489_v12 = vadd.f32 %v940_v5, %v4613_v20  ;;  %v970_v45 = vmul.f32 0.6931472, %v1997_v42  ;;  %v4615_v61 = vmax.f32 %v4581_v0, 0.0  ;;  %v998_v28 = vmul.f32 %v3492_v63, %v3313_v14 }
  0xcf   : > { %4606 = vst [vmem:[#allocation73_spill] sm:$0xff] %v3469_v55  ;;  %v1021_v60 = vand.u32 2147483647, %v3323_v37  ;;  %v4617_v27 = vmax.f32 %v4568_v6, 0.0  ;;  %vm1002_vm2 = vweird.f32 %v3313_v14  ;;  %v1013_v5 = vmul.f32 %v3499_v25, %v3323_v37 }
  0xd0   : > { %4610 = vst [vmem:[#allocation74_spill] sm:$0xff] %v3478_v26  ;;  %v3503_v1 = vadd.f32 %v949_v40, %v4615_v61  ;;  %vm1017_vm8 = vweird.f32 %v3323_v37  ;;  %v4619_v58 = vmax.f32 %v4582_v52, 0.0  ;;  %v999_v41 = vsub.f32 1.0, %v998_v28  ;;  %v3521_v29 = vpop.eup %2002 }
  0xd1   : > { %4612 = vst [vmem:[#allocation75_spill] sm:$0xff] %v3485_v16  ;;  %v3510_v46 = vadd.f32 %v958_v62, %v4617_v27  ;;  %v1009_v40 = vor.u32 1.1754944e-38, %v1008_v31  ;;  %2006 = vrcp.f32 %v3362_v43  ;;  %vm3523_vm9 = vcmp.eq.f32.partialorder %v1006_v19, 8.507059e+37 }
  0xd2   : > { %4614 = vst [vmem:[#allocation76_spill] sm:$0xff] %v3489_v12  ;;  %v3518_v13 = vadd.f32 %v967_v33, %v4619_v58  ;;  %v1014_v48 = vsub.f32 1.0, %v1013_v5  ;;  %v1024_v42 = vor.u32 1.1754944e-38, %v1023_v49  ;;  %vm1032_vm11 = vweird.f32 %v3331_v11 }
  0xd3   : > { %4616 = vst [vmem:[#allocation77_spill] sm:$0xff] %v3503_v1  ;;  %v1036_v22 = vand.u32 2147483647, %v3331_v11  ;;  %v976_v62 = vsel %vm3472_vm6, %v973_v15, %v970_v45  ;;  %v1000_v50 = vmul.f32 %v3492_v63, %v999_v41  ;;  %vm3532_vm14 = vcmp.eq.f32.partialorder %v1021_v60, 8.507059e+37  ;;  %v3539_v19 = vpop.eup %2004 }
  0xd4   : > { %4618 = vst [vmem:[#allocation78_spill] sm:$0xff] %v3510_v46  ;;  %v1028_v31 = vmul.f32 %v3521_v29, %v3331_v11  ;;  %v1038_v33 = vand.u32 2147483648, %v3331_v11  ;;  %vm1003_vm0 = vweird.f32 %v3492_v63  ;;  %v1015_v49 = vmul.f32 %v3499_v25, %v1014_v48 }
  0xd5   : > { %4620 = vst [vmem:[#allocation79_spill] sm:$0xff] %v3518_v13  ;;  %vm1047_vm7 = vweird.f32 %v3345_v54  ;;  %2008 = vrcp.f32 %v3367_v24  ;;  %vm1018_vm10 = vweird.f32 %v3499_v25  ;;  %v1043_v30 = vmul.f32 %v3539_v19, %v3345_v54  ;;  %vm3560_vm15 = vmor %vm1002_vm2, %vm1003_vm0 }
  0xd6   : > { %v1029_v15 = vsub.f32 1.0, %v1028_v31  ;;  %v1051_v45 = vand.u32 2147483647, %v3345_v54  ;;  %v4625_v61 = vmax.f32 %v4570_v9, 0.0  ;;  %v1001_v60 = vadd.f32 %v3492_v63, %v1000_v50  ;;  %vm3569_vm1 = vmor %vm1017_vm8, %vm1018_vm10 }
  0xd7   : > { %v1053_v27 = vand.u32 2147483648, %v3345_v54  ;;  %v1068_v5 = vand.u32 2147483648, %v3362_v43  ;;  %v3556_v58 = vpop.eup %2006  ;;  %v1016_v48 = vadd.f32 %v3499_v25, %v1015_v49  ;;  %2010 = vrcp.f32 %v3375_v17 }
  0xd8   : > { %v3551_v28 = vadd.f32 %v976_v62, %v4625_v61  ;;  %v1030_v31 = vmul.f32 %v3521_v29, %v1029_v15  ;;  %v1044_v62 = vsub.f32 1.0, %v1043_v30  ;;  %vm3573_vm12 = vcmp.eq.f32.partialorder %v1036_v22, 8.507059e+37 }
  0xd9   : > { %v1039_v14 = vor.u32 1.1754944e-38, %v1038_v33  ;;  %v1066_v49 = vand.u32 2147483647, %v3362_v43  ;;  %vm1033_vm13 = vweird.f32 %v3521_v29  ;;  %vm3582_vm3 = vcmp.eq.f32.partialorder %v1051_v45, 8.507059e+37 }
  0xda   : > { %4626 = vst [vmem:[#allocation80_spill] sm:$0xff] %v3551_v28  ;;  %v1058_v28 = vmul.f32 %v3556_v58, %v3362_v43  ;;  %v1045_v15 = vmul.f32 %v3539_v19, %v1044_v62  ;;  %vm1062_vm5 = vweird.f32 %v3362_v43  ;;  %v1005_v33 = vsel %vm3560_vm15, %v3492_v63, %v1001_v60  ;;  %vm3601_vm6 = vmor %vm1032_vm11, %vm1033_vm13 }
  0xdb   : > { %v3587_v22 = vpop.eup %2008  ;;  %vm1048_vm4 = vweird.f32 %v3539_v19  ;;  %v1054_v30 = vor.u32 1.1754944e-38, %v1053_v27  ;;  %v1020_v62 = vsel %vm3569_vm1, %v3499_v25, %v1016_v48  ;;  %v1031_v45 = vadd.f32 %v3521_v29, %v1030_v31 }
  0xdc   : > { %v1059_v13 = vsub.f32 1.0, %v1058_v28  ;;  %v1069_v46 = vor.u32 1.1754944e-38, %v1068_v5  ;;  %v1073_v1 = vmul.f32 %v3587_v22, %v3367_v24  ;;  %v1046_v63 = vadd.f32 %v3539_v19, %v1045_v15  ;;  %vm3623_vm11 = vmor %vm1047_vm7, %vm1048_vm4 }
  0xdd   : > { %vm3607_vm2 = vcmp.eq.f32.partialorder %v1066_v49, 8.507059e+37  ;;  %vm1077_vm8 = vweird.f32 %v3367_v24  ;;  %v1081_v25 = vand.u32 2147483647, %v3367_v24  ;;  %v3613_v27 = vpop.eup %2010  ;;  %v3617_v11 = vsel %vm3523_vm9, %v1009_v40, %v1005_v33 }
  0xde   : > { %v1060_v28 = vmul.f32 %v3556_v58, %v1059_v13  ;;  %v1074_v5 = vsub.f32 1.0, %v1073_v1  ;;  %v1083_v41 = vand.u32 2147483648, %v3367_v24  ;;  %2012 = vrcp.f32 %v3397_v59 }
  0xdf   : > { %v3631_v48 = vsel %vm3532_vm14, %v1024_v42, %v1020_v62  ;;  %vm1063_vm9 = vweird.f32 %v3556_v58  ;;  %v1088_v40 = vmul.f32 %v3613_v27, %v3375_v17  ;;  %v1096_v54 = vand.u32 2147483647, %v3375_v17 }
  0xe0   : > { %v1035_v44 = vsel %vm3601_vm6, %v3521_v29, %v1031_v45  ;;  %v1075_v1 = vmul.f32 %v3587_v22, %v1074_v5  ;;  %vm1078_vm0 = vweird.f32 %v3587_v22  ;;  %v1098_v31 = vand.u32 2147483648, %v3375_v17  ;;  %vm3650_vm14 = vmor %vm1062_vm5, %vm1063_vm9 }
  0xe1   : > { %v1050_v42 = vsel %vm3623_vm11, %v3539_v19, %v1046_v63  ;;  %v1061_v20 = vadd.f32 %v3556_v58, %v1060_v28  ;;  %v1089_v50 = vsub.f32 1.0, %v1088_v40  ;;  %2014 = vrcp.f32 %v3407_v10  ;;  %vm3666_vm15 = vmor %vm1077_vm8, %vm1078_vm0 }
  0xe2   : > { %v1076_v29 = vadd.f32 %v3587_v22, %v1075_v1  ;;  %vm3655_vm7 = vcmp.eq.f32.partialorder %v1081_v25, 8.507059e+37  ;;  %v1084_v15 = vor.u32 1.1754944e-38, %v1083_v41  ;;  %vm1092_vm10 = vweird.f32 %v3375_v17 }
  0xe3   : > { %v3662_v19 = vsel %vm3573_vm12, %v1039_v14, %v1035_v44  ;;  %v1090_v33 = vmul.f32 %v3613_v27, %v1089_v50  ;;  %vm3671_vm1 = vcmp.eq.f32.partialorder %v1096_v54, 8.507059e+37  ;;  %2016 = vrcp.f32 %v3423_v18 }
  0xe4   : > { %v2013_v45 = vpop.eup %2012  ;;  %v3678_v61 = vsel %vm3582_vm3, %v1054_v30, %v1050_v42  ;;  %vm1093_vm12 = vweird.f32 %v3613_v27  ;;  %vm1107_vm13 = vweird.f32 %v3397_v59  ;;  %v1111_v24 = vand.u32 2147483647, %v3397_v59 }
  0xe5   : > { %v1065_v14 = vsel %vm3650_vm14, %v3556_v58, %v1061_v20  ;;  %v1099_v63 = vor.u32 1.1754944e-38, %v1098_v31  ;;  %v1103_v28 = vmul.f32 %v2013_v45, %v3397_v59  ;;  %v1113_v25 = vand.u32 2147483648, %v3397_v59  ;;  %vm3696_vm5 = vmor %vm1092_vm10, %vm1093_vm12 }
  0xe6   : > { %v1080_v37 = vsel %vm3666_vm15, %v3587_v22, %v1076_v29  ;;  %v1091_v30 = vadd.f32 %v3613_v27, %v1090_v33  ;;  %vm1122_vm3 = vweird.f32 %v3407_v10  ;;  %v1126_v13 = vand.u32 2147483647, %v3407_v10 }
  0xe7   : > { %v2015_v5 = vpop.eup %2014  ;;  %v1104_v41 = vsub.f32 1.0, %v1103_v28  ;;  %vm1108_vm4 = vweird.f32 %v2013_v45  ;;  %v1128_v40 = vand.u32 2147483648, %v3407_v10  ;;  %v1141_v54 = vand.u32 2147483647, %v3423_v18 }
  0xe8   : > { %v1070_v22 = vsel %vm3607_vm2, %v1069_v46, %v1065_v14  ;;  %vm3704_vm6 = vcmp.eq.f32.partialorder %v1111_v24, 8.507059e+37  ;;  %v1118_v1 = vmul.f32 %v2015_v5, %v3407_v10  ;;  %v1143_v17 = vand.u32 2147483648, %v3423_v18  ;;  %vm3718_vm2 = vmor %vm1107_vm13, %vm1108_vm4 }
  0xe9   : > { %v2017_v31 = vpop.eup %2016  ;;  %v1085_v42 = vsel %vm3655_vm7, %v1084_v15, %v1080_v37  ;;  %v1105_v20 = vmul.f32 %v2013_v45, %v1104_v41  ;;  %v1114_v50 = vor.u32 1.1754944e-38, %v1113_v25  ;;  %vm1137_vm8 = vweird.f32 %v3423_v18 }
  0xea   : > { %v1095_v46 = vsel %vm3696_vm5, %v3613_v27, %v1091_v30  ;;  %v1119_v12 = vsub.f32 1.0, %v1118_v1  ;;  %vm1123_vm11 = vweird.f32 %v2015_v5  ;;  %v1133_v29 = vmul.f32 %v2017_v31, %v3423_v18 }
  0xeb   : > { %v1106_v49 = vadd.f32 %v2013_v45, %v1105_v20  ;;  %vm3723_vm9 = vcmp.eq.f32.partialorder %v1126_v13, 8.507059e+37  ;;  %v1129_v43 = vor.u32 1.1754944e-38, %v1128_v40  ;;  %vm3727_vm0 = vcmp.eq.f32.partialorder %v1141_v54, 8.507059e+37  ;;  %vm3737_vm7 = vmor %vm1122_vm3, %vm1123_vm11 }
  0xec   : > { %v1120_v27 = vmul.f32 %v2015_v5, %v1119_v12  ;;  %v1134_v59 = vsub.f32 1.0, %v1133_v29  ;;  %vm1138_vm14 = vweird.f32 %v2017_v31  ;;  %v1144_v24 = vor.u32 1.1754944e-38, %v1143_v17  ;;  %v4690_v12 = vld [vmem:[#allocation49_spill] sm:$0xff] }
  0xed   : > { %v1100_v14 = vsel %vm3671_vm1, %v1099_v63, %v1095_v46  ;;  %v1110_v28 = vsel %vm3718_vm2, %v2013_v45, %v1106_v49  ;;  %vm1147_vm10 = vcmp.ge.f32.partialorder %v2661_v8, 0.0  ;;  %vm1148_vm15 = vcmp.ge.f32.partialorder %v2664_v39, 0.0  ;;  %vm3749_vm1 = vmor %vm1137_vm8, %vm1138_vm14 }
  0xee   : > { %v1121_v37 = vadd.f32 %v2015_v5, %v1120_v27  ;;  %v1135_v30 = vmul.f32 %v2017_v31, %v1134_v59  ;;  %vm1149_vm12 = vcmp.ge.f32.partialorder %v2668_v3, 0.0  ;;  %vm1150_vm13 = vcmp.ge.f32.partialorder %v2670_v35, 0.0  ;;  %v4689_v27 = vld [vmem:[#allocation60_spill] sm:$0xff] }
  0xef   : > { %v1115_v62 = vsel %vm3704_vm6, %v1114_v50, %v1110_v28  ;;  %vm1151_vm3 = vcmp.ge.f32.partialorder %v4563_v4, 0.0  ;;  %vm1152_vm5 = vcmp.ge.f32.partialorder %v4565_v51, 0.0  ;;  %v1157_v45 = vmul.f32 %v3280_v53, %v3617_v11  ;;  %v4692_v50 = vld [vmem:[#allocation44_spill] sm:$0xff] }
  0xf0   : > { %v1125_v63 = vsel %vm3737_vm7, %v2015_v5, %v1121_v37  ;;  %v1136_v13 = vadd.f32 %v2017_v31, %v1135_v30  ;;  %v1158_v58 = vmul.f32 %v3304_v23, %v3631_v48  ;;  %v1159_v18 = vmul.f32 %v3308_v21, %v3662_v19 }
  0xf1   : > { %v1130_v41 = vsel %vm3723_vm9, %v1129_v43, %v1125_v63  ;;  %v1160_v40 = vmul.f32 %v3318_v56, %v3678_v61  ;;  %v1161_v54 = vmul.f32 %v3326_v47, %v1070_v22  ;;  %v1162_v53 = vmul.f32 %v3333_v2, %v1085_v42 }
  0xf2   : > { %v1140_v5 = vsel %vm3749_vm1, %v2017_v31, %v1136_v13  ;;  %vm1153_vm4 = vcmp.ge.f32.partialorder %v4581_v0, 0.0  ;;  %v1163_v23 = vmul.f32 %v3339_v32, %v1100_v14  ;;  %v1164_v44 = vmul.f32 %v3347_v36, %v1115_v62  ;;  %v4699_v13 = vld [vmem:[#allocation52_spill] sm:$0xff] }
  0xf3   : > { %v1145_v21 = vsel %vm3727_vm0, %v1144_v24, %v1140_v5  ;;  %vm1154_vm6 = vcmp.ge.f32.partialorder %v4568_v6, 0.0  ;;  %vm1155_vm8 = vcmp.ge.f32.partialorder %v4582_v52, 0.0  ;;  %v1165_v56 = vmul.f32 %v3354_v34, %v1130_v41  ;;  %v4686_v5 = vld [vmem:[#allocation41_spill] sm:$0xff] }
  0xf4   : > { %vm1156_vm2 = vcmp.ge.f32.partialorder %v4570_v9, 0.0  ;;  %v1166_v47 = vmul.f32 %v3369_v57, %v1145_v21  ;;  %v1167_v0 = vsel %vm1147_vm10, %v3617_v11, %v1157_v45  ;;  %v1168_v2 = vsel %vm1148_vm15, %v3631_v48, %v1158_v58  ;;  %v4702_v9 = vld [vmem:[#allocation55_spill] sm:$0xff] }
  0xf5   : > { %v1169_v6 = vsel %vm1149_vm12, %v3662_v19, %v1159_v18  ;;  %v1170_v32 = vsel %vm1150_vm13, %v3678_v61, %v1160_v40  ;;  %v1171_v52 = vsel %vm1151_vm3, %v1070_v22, %v1161_v54  ;;  %v1172_v57 = vsel %vm1152_vm5, %v1085_v42, %v1162_v53  ;;  %v4685_v54 = vld [vmem:[#allocation58_spill] sm:$0xff] }
  0xf6   : > { %v1173_v8 = vsel %vm1153_vm4, %v1100_v14, %v1163_v23  ;;  %v1174_v36 = vsel %vm1154_vm6, %v1115_v62, %v1164_v44  ;;  %v1175_v3 = vsel %vm1155_vm8, %v1130_v41, %v1165_v56  ;;  %v1176_v51 = vsel %vm1156_vm2, %v1145_v21, %v1166_v47  ;;  %v4684_v41 = vld [vmem:[#allocation57_spill] sm:$0xff]  ;;  %v4687_v44 = vld [vmem:[#allocation59_spill] sm:$0xff]  ;;  %v4698_v18 = vld [vmem:[#allocation50_spill] sm:$0xff] }
  0xf7   : > { %v3826_v40 = vsub.f32 %v4684_v41, %v1167_v0  ;;  %v3829_v53 = vsub.f32 %v4685_v54, %v1168_v2  ;;  %v3832_v23 = vsub.f32 %v4686_v5, %v1169_v6  ;;  %v3835_v21 = vsub.f32 %v4687_v44, %v1170_v32  ;;  %v4688_v56 = vld [vmem:[#allocation43_spill] sm:$0xff]  ;;  %v4691_v0 = vld [vmem:[#allocation42_spill] sm:$0xff]  ;;  %v4694_v44 = vld [vmem:[#allocation45_spill] sm:$0xff] }
  0xf8   : > { %v3838_v47 = vsub.f32 %v4688_v56, %v1171_v52  ;;  %v3841_v15 = vsub.f32 %v4689_v27, %v1172_v57  ;;  %v3844_v46 = vsub.f32 %v4690_v12, %v1173_v8  ;;  %v1217_v54 = vand.u32 2147483647, %v4691_v0  ;;  %v4693_v6 = vld [vmem:[#allocation54_spill] sm:$0xff]  ;;  %v4696_v57 = vld [vmem:[#allocation71_spill] sm:$0xff]  ;;  %v4697_v8 = vld [vmem:[#allocation48_spill] sm:$0xff] }
  0xf9   : > { %v3850_v5 = vsub.f32 %v4693_v6, %v1174_v36  ;;  %v1218_v32 = vand.u32 2147483647, %v4692_v50  ;;  %v1219_v52 = vand.u32 2147483647, %v4694_v44  ;;  %v4695_v56 = vld [vmem:[#allocation46_spill] sm:$0xff]  ;;  %v3856_v27 = vsub.f32 %v4696_v57, %v1175_v3  ;;  %v4700_v62 = vld [vmem:[#allocation72_spill] sm:$0xff] }
  0xfa   : > { %v1220_v20 = vand.u32 2147483647, %v4695_v56  ;;  %v1221_v12 = vand.u32 2147483647, %v4697_v8  ;;  %v1222_v17 = vand.u32 2147483647, %v4698_v18  ;;  %v3862_v37 = vsub.f32 %v4700_v62, %v1176_v51 }
  0xfb   : > { %v1223_v45 = vand.u32 2147483647, %v4699_v13  ;;  %v4701_v36 = vld [vmem:[#allocation53_spill] sm:$0xff]  ;;  %v1225_v28 = vand.u32 2147483647, %v4702_v9  ;;  %v4703_v14 = vld [vmem:[#allocation56_spill] sm:$0xff] }
  0xfc   : > { %v1224_v6 = vand.u32 2147483647, %v4701_v36  ;;  %v1226_v39 = vand.u32 2147483647, %v4703_v14  ;;  %v1227_v24 = vsub.f32 0.0, %v1217_v54  ;;  %v1228_v59 = vsub.f32 0.0, %v1218_v32 }
  0xfd   : > { %v1229_v2 = vsub.f32 0.0, %v1219_v52  ;;  %v1230_v3 = vsub.f32 0.0, %v1220_v20  ;;  %v1231_v43 = vsub.f32 0.0, %v1221_v12  ;;  %v1232_v33 = vsub.f32 0.0, %v1222_v17  ;;  %v4708_v12 = vld [vmem:[#allocation22_spill] sm:$0xff]  ;;  %v4710_v32 = vld [vmem:[#allocation23_spill] sm:$0xff] }
  0xfe   : > { %v1233_v29 = vsub.f32 0.0, %v1223_v45  ;;  %v1234_v49 = vsub.f32 0.0, %v1224_v6  ;;  %v1237_v51 = vmul.f32 1.442695, %v1227_v24  ;;  %v1239_v62 = vmul.f32 1.442695, %v1228_v59 }
  0xff   : > { %v1235_v42 = vsub.f32 0.0, %v1225_v28  ;;  %v1236_v60 = vsub.f32 0.0, %v1226_v39  ;;  %v1241_v4 = vmul.f32 1.442695, %v1229_v2  ;;  %v1243_v22 = vmul.f32 1.442695, %v1230_v3 }
 0x100   : > { %2018 = vpow2.f32 %v1237_v51  ;;  %v1245_v20 = vmul.f32 1.442695, %v1231_v43  ;;  %v1247_v59 = vmul.f32 1.442695, %v1232_v33  ;;  %v1249_v39 = vmul.f32 1.442695, %v1233_v29 }
 0x101   : > { %2020 = vpow2.f32 %v1239_v62  ;;  %v1251_v28 = vmul.f32 1.442695, %v1234_v49  ;;  %v1253_v45 = vmul.f32 1.442695, %v1235_v42  ;;  %v1255_v2 = vmul.f32 1.442695, %v1236_v60 }
 0x102   : > { %2022 = vpow2.f32 %v1241_v4  ;;  %v4706_v6 = vld [vmem:[#allocation21_spill] sm:$0xff]  ;;  %v4709_v42 = vmax.f32 %v4708_v12, -7.0  ;;  %v4711_v54 = vmax.f32 %v4710_v32, -7.0  ;;  %v4716_v3 = vld [vmem:[#allocation26_spill] sm:$0xff]  ;;  %vm1387_vm3 = vcmp.gt.f32.partialorder %v3826_v40, 1e-05 }
 0x103   : > { %2024 = vpow2.f32 %v1243_v22  ;;  %v4707_v43 = vmax.f32 %v4706_v6, -7.0  ;;  %v4714_v41 = vld [vmem:[#allocation25_spill] sm:$0xff]  ;;  %vm1388_vm5 = vcmp.gt.f32.partialorder %v3829_v53, 1e-05  ;;  %vm1389_vm4 = vcmp.gt.f32.partialorder %v3832_v23, 1e-05 }
 0x104   : > { %2026 = vpow2.f32 %v1245_v20  ;;  %v3895_v60 = vsub.f32 %v4692_v50, %v4709_v42  ;;  %v3900_v4 = vsub.f32 %v4694_v44, %v4711_v54  ;;  %vm1390_vm6 = vcmp.gt.f32.partialorder %v3835_v21, 1e-05 }
 0x105   : > { %2028 = vpow2.f32 %v1247_v59  ;;  %v3889_v17 = vsub.f32 %v4691_v0, %v4707_v43  ;;  %vm1391_vm8 = vcmp.gt.f32.partialorder %v3838_v47, 1e-05  ;;  %vm1392_vm2 = vcmp.gt.f32.partialorder %v3841_v15, 1e-05 }
 0x106   : > { %v2019_v22 = vpop.eup %2018  ;;  %2030 = vpow2.f32 %v1249_v39 }
 0x107   : > { %v2021_v33 = vpop.eup %2020  ;;  %v1257_v20 = vadd.f32 1.0, %v2019_v22  ;;  %2032 = vpow2.f32 %v1251_v28  ;;  %v1260_v29 = vmul.f32 -0.5, %v2019_v22  ;;  %v1263_v39 = vand.u32 2147483647, %v2019_v22  ;;  %v4712_v28 = vld [vmem:[#allocation24_spill] sm:$0xff] }
 0x108   : > { %v2023_v62 = vpop.eup %2022  ;;  %v1266_v59 = vadd.f32 1.0, %v2021_v33  ;;  %2034 = vpow2.f32 %v1253_v45  ;;  %v1269_v24 = vmul.f32 -0.5, %v2021_v33  ;;  %v4713_v35 = vmax.f32 %v4712_v28, -7.0 }
 0x109   : > { %v2025_v49 = vpop.eup %2024  ;;  %v1275_v52 = vadd.f32 1.0, %v2023_v62  ;;  %2036 = vlog2.f32 %v1257_v20  ;;  %v1278_v43 = vmul.f32 -0.5, %v2023_v62  ;;  %v4715_v45 = vmax.f32 %v4714_v41, -7.0 }
 0x10a   : > { %v2027_v6 = vpop.eup %2026  ;;  %v3905_v12 = vsub.f32 %v4695_v56, %v4713_v35  ;;  %2038 = vlog2.f32 %v1266_v59  ;;  %v1284_v42 = vadd.f32 1.0, %v2025_v49  ;;  %v4717_v20 = vmax.f32 %v4716_v3, -7.0 }
 0x10b   : > { %v3910_v57 = vsub.f32 %v4697_v8, %v4715_v45  ;;  %v2029_v32 = vpop.eup %2028  ;;  %2040 = vpow2.f32 %v1255_v2  ;;  %v1261_v54 = vadd.f32 1.0, %v1260_v29  ;;  %v1272_v61 = vand.u32 2147483647, %v2021_v33 }
 0x10c   : > { %v3915_v51 = vsub.f32 %v4698_v18, %v4717_v20  ;;  %v1287_v28 = vmul.f32 -0.5, %v2025_v49  ;;  %v3917_v19 = vpop.eup %2030  ;;  %vm3919_vm11 = vcmp.lt.f32.partialorder %v1263_v39, 0.0004427343  ;;  %v1270_v41 = vadd.f32 1.0, %v1269_v24 }
 0x10d   : > { %2042 = vlog2.f32 %v1275_v52  ;;  %v1293_v59 = vadd.f32 1.0, %v2027_v6  ;;  %v3923_v45 = vpop.eup %2032  ;;  %v1279_v3 = vadd.f32 1.0, %v1278_v43  ;;  %v1281_v31 = vand.u32 2147483647, %v2023_v62 }
 0x10e   : > { %2044 = vlog2.f32 %v1284_v42  ;;  %v1296_v20 = vmul.f32 -0.5, %v2027_v6  ;;  %v3925_v58 = vpop.eup %2034  ;;  %v1290_v2 = vand.u32 2147483647, %v2025_v49  ;;  %v1302_v29 = vadd.f32 1.0, %v2029_v32 }
 0x10f   : > { %2046 = vlog2.f32 %v1293_v59  ;;  %v1305_v48 = vmul.f32 -0.5, %v2029_v32  ;;  %v2037_v1 = vpop.eup %2036  ;;  %vm3927_vm9 = vcmp.lt.f32.partialorder %v1272_v61, 0.0004427343  ;;  %v1288_v24 = vadd.f32 1.0, %v1287_v28 }
 0x110   : > { %v1297_v52 = vadd.f32 1.0, %v1296_v20  ;;  %v1299_v63 = vand.u32 2147483647, %v2027_v6  ;;  %v2039_v10 = vpop.eup %2038  ;;  %v1262_v30 = vmul.f32 %v2019_v22, %v1261_v54  ;;  %2048 = vlog2.f32 %v1302_v29 }
 0x111   : > { %v1308_v43 = vand.u32 2147483647, %v2029_v32  ;;  %v1311_v42 = vadd.f32 1.0, %v3917_v19  ;;  %v3932_v25 = vpop.eup %2040  ;;  %v1259_v16 = vmul.f32 0.6931472, %v2037_v1  ;;  %v1271_v59 = vmul.f32 %v2021_v33, %v1270_v41 }
 0x112   : > { %v1306_v26 = vadd.f32 1.0, %v1305_v48  ;;  %v1314_v55 = vmul.f32 -0.5, %v3917_v19  ;;  %v1280_v34 = vmul.f32 %v2023_v62, %v1279_v3  ;;  %vm3935_vm0 = vcmp.lt.f32.partialorder %v1281_v31, 0.0004427343 }
 0x113   : > { %v2043_v61 = vpop.eup %2042  ;;  %vm3939_vm14 = vcmp.lt.f32.partialorder %v1290_v2, 0.0004427343  ;;  %2050 = vlog2.f32 %v1311_v42  ;;  %v1268_v54 = vmul.f32 0.6931472, %v2039_v10  ;;  %v1289_v20 = vmul.f32 %v2025_v49, %v1288_v24 }
 0x114   : > { %v2045_v22 = vpop.eup %2044  ;;  %v1298_v29 = vmul.f32 %v2027_v6, %v1297_v52  ;;  %vm3943_vm7 = vcmp.lt.f32.partialorder %v1299_v63, 0.0004427343  ;;  %vm3947_vm10 = vcmp.lt.f32.partialorder %v1308_v43, 0.0004427343  ;;  %v1315_v31 = vadd.f32 1.0, %v1314_v55 }
 0x115   : > { %v2047_v48 = vpop.eup %2046  ;;  %v1320_v33 = vadd.f32 1.0, %v3923_v45  ;;  %v1323_v41 = vmul.f32 -0.5, %v3923_v45  ;;  %v1265_v3 = vsel %vm3919_vm11, %v1262_v30, %v1259_v16  ;;  %v1277_v10 = vmul.f32 0.6931472, %v2043_v61 }
 0x116   : > { %v1307_v49 = vmul.f32 %v2029_v32, %v1306_v26  ;;  %v1317_v63 = vand.u32 2147483647, %v3917_v19  ;;  %v2049_v6 = vpop.eup %2048  ;;  %v1286_v2 = vmul.f32 0.6931472, %v2045_v22  ;;  %v1326_v24 = vand.u32 2147483647, %v3923_v45 }
 0x117   : > { %2052 = vlog2.f32 %v1320_v33  ;;  %v1329_v52 = vadd.f32 1.0, %v3925_v58  ;;  %v1295_v43 = vmul.f32 0.6931472, %v2047_v48  ;;  %v1304_v55 = vmul.f32 0.6931472, %v2049_v6 }
 0x118   : > { %v1324_v42 = vadd.f32 1.0, %v1323_v41  ;;  %v1332_v7 = vmul.f32 -0.5, %v3925_v58  ;;  %v1316_v35 = vmul.f32 %v3917_v19, %v1315_v31  ;;  %v1338_v26 = vadd.f32 1.0, %v3932_v25 }
 0x119   : > { %v2051_v38 = vpop.eup %2050  ;;  %2054 = vlog2.f32 %v1329_v52  ;;  %v1341_v16 = vmul.f32 -0.5, %v3932_v25  ;;  %v1274_v30 = vsel %vm3927_vm9, %v1271_v59, %v1268_v54  ;;  %vm3964_vm15 = vcmp.lt.f32.partialorder %v1317_v63, 0.0004427343 }
 0x11a   : > { %v1313_v32 = vmul.f32 0.6931472, %v2051_v38  ;;  %v1333_v22 = vadd.f32 1.0, %v1332_v7  ;;  %v1283_v48 = vsel %vm3935_vm0, %v1280_v34, %v1277_v10  ;;  %v1292_v19 = vsel %vm3939_vm14, %v1289_v20, %v1286_v2 }
 0x11b   : > { %v1335_v31 = vand.u32 2147483647, %v3925_v58  ;;  %2056 = vlog2.f32 %v1338_v26  ;;  %v1301_v33 = vsel %vm3943_vm7, %v1298_v29, %v1295_v43  ;;  %v1310_v38 = vsel %vm3947_vm10, %v1307_v49, %v1304_v55  ;;  %v4746_v26 = vld [vmem:[#allocation27_spill] sm:$0xff] }
 0x11c   : > { %v1325_v39 = vmul.f32 %v3923_v45, %v1324_v42  ;;  %v1342_v59 = vadd.f32 1.0, %v1341_v16  ;;  %v1319_v7 = vsel %vm3964_vm15, %v1316_v35, %v1313_v32  ;;  %vm3980_vm12 = vcmp.lt.f32.partialorder %v1326_v24, 0.0004427343  ;;  %v4066_v35 = vld [vmem:[%s2489_s20 + $0x8] sm:$0xff] }
 0x11d   : > { %v2053_v54 = vpop.eup %2052  ;;  %v1344_v11 = vand.u32 2147483647, %v3932_v25  ;;  %v4734_v28 = vmax.f32 %v4691_v0, 0.0  ;;  %v1334_v1 = vmul.f32 %v3925_v58, %v1333_v22  ;;  %v4735_v62 = vmax.f32 %v4692_v50, 0.0 }
 0x11e   : > { %v1322_v29 = vmul.f32 0.6931472, %v2053_v54  ;;  %v4736_v41 = vmax.f32 %v4694_v44, 0.0  ;;  %vm3992_vm13 = vcmp.lt.f32.partialorder %v1335_v31, 0.0004427343  ;;  %v4739_v6 = vmax.f32 %v4695_v56, 0.0 }
 0x11f   : > { %v1347_v20 = vadd.f32 %v1265_v3, %v4734_v28  ;;  %v1348_v45 = vadd.f32 %v1274_v30, %v4735_v62  ;;  %v2055_v49 = vpop.eup %2054  ;;  %v4740_v0 = vmax.f32 %v4697_v8, 0.0  ;;  %v4741_v24 = vmax.f32 %v4698_v18, 0.0  ;;  %v4754_v62 = vld [vmem:[#allocation30_spill] sm:$0xff] }
 0x120   : > { %v1349_v10 = vadd.f32 %v1283_v48, %v4736_v41  ;;  %v1350_v2 = vadd.f32 %v1292_v19, %v4739_v6  ;;  %v1328_v50 = vsel %vm3980_vm12, %v1325_v39, %v1322_v29  ;;  %v1331_v52 = vmul.f32 0.6931472, %v2055_v49 }
 0x121   : > { %v1351_v3 = vadd.f32 %v1301_v33, %v4740_v0  ;;  %v1352_v58 = vadd.f32 %v1310_v38, %v4741_v24  ;;  %v1343_v44 = vmul.f32 %v3932_v25, %v1342_v59  ;;  %v4742_v43 = vmax.f32 %v4699_v13, 0.0  ;;  %v2057_v42 = vpop.eup %2056  ;;  %v4749_v59 = vld [vmem:[#allocation28_spill] sm:$0xff] }
 0x122   : > { %vm4007_vm1 = vcmp.lt.f32.partialorder %v1344_v11, 0.0004427343  ;;  %v4745_v56 = vmax.f32 %v4701_v36, 0.0  ;;  %v4747_v18 = vmax.f32 %v4746_v26, -7.0  ;;  %v1367_v30 = vmul.f32 2.0, %v1347_v20  ;;  %v4752_v20 = vld [vmem:[#allocation29_spill] sm:$0xff] }
 0x123   : > { %v1353_v55 = vadd.f32 %v1319_v7, %v4742_v43  ;;  %v1337_v32 = vsel %vm3992_vm13, %v1334_v1, %v1331_v52  ;;  %v1340_v25 = vmul.f32 0.6931472, %v2057_v42  ;;  %v1368_v61 = vmul.f32 2.0, %v1348_v45  ;;  %v4063_v42 = vld [vmem:[%s2489_s20] sm:$0xff] }
 0x124   : > { %v1354_v8 = vadd.f32 %v1328_v50, %v4745_v56  ;;  %v1363_v16 = vsub.f32 %v4699_v13, %v4747_v18  ;;  %v1369_v22 = vmul.f32 2.0, %v1349_v10  ;;  %v4748_v48 = vmax.f32 %v4702_v9, 0.0 }
 0x125   : > { %v1370_v31 = vmul.f32 2.0, %v1350_v2  ;;  %v1371_v33 = vmul.f32 2.0, %v1351_v3  ;;  %v1372_v38 = vmul.f32 2.0, %v1352_v58  ;;  %v1346_v39 = vsel %vm4007_vm1, %v1343_v44, %v1340_v25 }
 0x126   : > { %v1355_v19 = vadd.f32 %v1337_v32, %v4748_v48  ;;  %v4750_v54 = vmax.f32 %v4749_v59, -7.0  ;;  %v1373_v7 = vmul.f32 2.0, %v1353_v55  ;;  %v1374_v34 = vmul.f32 2.0, %v1354_v8  ;;  %v4075_v48 = vld [vmem:[%s2489_s20 + $0x20] sm:$0xff] }
 0x127   : > { %v4751_v11 = vmax.f32 %v4703_v14, 0.0  ;;  %v4753_v29 = vmax.f32 %v4752_v20, -7.0  ;;  %v4755_v45 = vmax.f32 %v4754_v62, -7.0  ;;  %v1377_v49 = vsub.f32 %v3889_v17, %v1367_v30  ;;  %v4766_v20 = vld [vmem:[#allocation70_spill] sm:$0xff] }
 0x128   : > { %v1364_v13 = vsub.f32 %v4701_v36, %v4750_v54  ;;  %v1375_v10 = vmul.f32 2.0, %v1355_v19  ;;  %v1378_v63 = vsub.f32 %v3895_v60, %v1368_v61  ;;  %v1379_v36 = vsub.f32 %v3900_v4, %v1369_v22  ;;  %v4078_v19 = vld [vmem:[%s2489_s20 + $0x28] sm:$0xff]  ;;  %v4089_v54 = vld [vmem:[%s2489_s20 + $0x10] sm:$0xff] }
 0x129   : > { %v1356_v28 = vadd.f32 %v1346_v39, %v4751_v11  ;;  %v1365_v1 = vsub.f32 %v4702_v9, %v4753_v29  ;;  %v4033_v41 = vsub.f32 %v4703_v14, %v4755_v45  ;;  %v4756_v6 = vmax.f32 %v3826_v40, 1e-12  ;;  %v4085_v39 = vld [vmem:[%s2506_s26] sm:$0xff]  ;;  %v4767_v29 = vld [vmem:[#allocation40_spill] sm:$0xff] }
 0x12a   : > { %v1380_v0 = vsub.f32 %v3905_v12, %v1370_v31  ;;  %v1381_v9 = vsub.f32 %v3910_v57, %v1371_v33  ;;  %v1382_v3 = vsub.f32 %v3915_v51, %v1372_v38  ;;  %v1383_v24 = vsub.f32 %v1363_v16, %v1373_v7 }
 0x12b   : > { %2058 = vlog2.f32 %v4756_v6  ;;  %v1376_v2 = vmul.f32 2.0, %v1356_v28  ;;  %v1384_v14 = vsub.f32 %v1364_v13, %v1374_v34  ;;  %v4757_v17 = vmax.f32 %v3829_v53, 1e-12  ;;  %v4092_v13 = vld [vmem:[%s2489_s20 + $0x30] sm:$0xff] }
 0x12c   : > { %v1385_v60 = vsub.f32 %v1365_v1, %v1375_v10  ;;  %v4758_v4 = vmax.f32 %v3832_v23, 1e-12  ;;  %v4759_v57 = vmax.f32 %v3835_v21, 1e-12  ;;  %vm1393_vm11 = vcmp.gt.f32.partialorder %v3844_v46, 1e-05 }
 0x12d   : > { %2060 = vlog2.f32 %v4757_v17  ;;  %v1386_v51 = vsub.f32 %v4033_v41, %v1376_v2  ;;  %v4760_v12 = vmax.f32 %v3838_v47, 1e-12  ;;  %v1780_v58 = vadd.f32 -4.8481164, %v1377_v49  ;;  %v4104_v10 = vld [vmem:[%s2489_s20 + $0x18] sm:$0xff]  ;;  %v4768_v6 = vld [vmem:[#allocation47_spill] sm:$0xff] }
 0x12e   : > { %2062 = vlog2.f32 %v4758_v4  ;;  %vm1394_vm9 = vcmp.gt.f32.partialorder %v3850_v5, 1e-05  ;;  %v4761_v52 = vmax.f32 %v3841_v15, 1e-12  ;;  %v1781_v44 = vadd.f32 -4.8481164, %v1378_v63 }
 0x12f   : > { %2064 = vlog2.f32 %v4759_v57  ;;  %v1782_v43 = vadd.f32 -4.8481164, %v1379_v36  ;;  %v1783_v55 = vadd.f32 -4.8481164, %v1380_v0  ;;  %vm1395_vm0 = vcmp.gt.f32.partialorder %v3856_v27, 1e-05 }
 0x130   : > { %2066 = vlog2.f32 %v4760_v12  ;;  %v4762_v8 = vmax.f32 %v3844_v46, 1e-12  ;;  %v1784_v26 = vadd.f32 -4.8481164, %v1381_v9  ;;  %v1785_v18 = vadd.f32 -4.8481164, %v1382_v3 }
 0x131   : > { %v2059_v50 = vpop.eup %2058  ;;  %2068 = vlog2.f32 %v4761_v52  ;;  %vm1396_vm14 = vcmp.gt.f32.partialorder %v3862_v37, 1e-05  ;;  %v4763_v30 = vmax.f32 %v3850_v5, 1e-12  ;;  %v1786_v32 = vadd.f32 -4.8481164, %v1383_v24 }
 0x132   : > { %v1408_v56 = vmul.f32 0.6931472, %v2059_v50  ;;  %2070 = vlog2.f32 %v4762_v8  ;;  %v1787_v25 = vadd.f32 -4.8481164, %v1384_v14  ;;  %v1788_v61 = vadd.f32 -4.8481164, %v1385_v60 }
 0x133   : > { %v2061_v16 = vpop.eup %2060  ;;  %2072 = vlog2.f32 %v4763_v30  ;;  %v4764_v33 = vmax.f32 %v3856_v27, 1e-12  ;;  %vm1447_vm7 = vcmp.gt.f32.partialorder %v4085_v39, 0.999  ;;  %v4765_v34 = vmax.f32 %v3862_v37, 1e-12 }
 0x134   : > { %v2063_v22 = vpop.eup %2062  ;;  %v1410_v31 = vmul.f32 0.6931472, %v2061_v16  ;;  %v1437_v38 = vsel %vm1387_vm3, %v1408_v56, %v1780_v58  ;;  %v1473_v40 = vmax.f32 %v4063_v42, %v4075_v48  ;;  %v1474_v11 = vmax.f32 %v4066_v35, %v4078_v19  ;;  %v4107_v49 = vld [vmem:[%s2489_s20 + $0x38] sm:$0xff]  ;;  %v4118_v24 = vld [vmem:[%s2489_s20 + $0x40] sm:$0xff]  ;;  %v4121_v14 = vld [vmem:[%s2489_s20 + $0x48] sm:$0xff] }
 0x135   : > { %2074 = vlog2.f32 %v4764_v33  ;;  %v2065_v59 = vpop.eup %2064  ;;  %v1412_v7 = vmul.f32 0.6931472, %v2063_v22  ;;  %v1186_v1 = vsub.f32 %v4767_v29, %v4766_v20  ;;  %v1789_v45 = vadd.f32 -4.8481164, %v1386_v51  ;;  %v4772_v56 = vld [vmem:[#allocation31_spill] sm:$0xff]  ;;  %v4773_v8 = vld [vmem:[#allocation61_spill] sm:$0xff] }
 0x136   : > { %2076 = vlog2.f32 %v4765_v34  ;;  %v2067_v28 = vpop.eup %2066  ;;  %v1414_v62 = vmul.f32 0.6931472, %v2065_v59  ;;  %vm1460_vm10 = vcmp.lt.f32.partialorder %v4085_v39, -0.999  ;;  %v1438_v36 = vsel %vm1388_vm5, %v1410_v31, %v1781_v44  ;;  %v4775_v31 = vld [vmem:[#allocation73_spill] sm:$0xff]  ;;  %v4785_v5 = vld [vmem:[#allocation78_spill] sm:$0xff] }
 0x137   : > { %v2069_v41 = vpop.eup %2068  ;;  %v1416_v63 = vmul.f32 0.6931472, %v2067_v28  ;;  %v4769_v2 = vsub.f32 0.0, %v4768_v6  ;;  %v1475_v9 = vmax.f32 %v4089_v54, %v4092_v13  ;;  %v1439_v60 = vsel %vm1389_vm4, %v1412_v7, %v1782_v43  ;;  %v4770_v43 = vld [vmem:[#allocation51_spill] sm:$0xff] }
 0x138   : > { %v2071_v3 = vpop.eup %2070  ;;  %v1418_v17 = vmul.f32 0.6931472, %v2069_v41  ;;  %v1440_v53 = vsel %vm1390_vm6, %v1414_v62, %v1783_v55  ;;  %v1476_v4 = vmax.f32 %v4104_v10, %v4107_v49  ;;  %v1477_v58 = vmax.f32 %v1473_v40, %v4118_v24  ;;  %v4779_v40 = vld [vmem:[#allocation75_spill] sm:$0xff]  ;;  %v4783_v62 = vld [vmem:[#allocation77_spill] sm:$0xff] }
 0x139   : > { %v1450_v0 = vsel %vm1447_vm7, %v4769_v2, %v1437_v38  ;;  %v2073_v57 = vpop.eup %2072  ;;  %v1420_v51 = vmul.f32 0.6931472, %v2071_v3  ;;  %v1441_v12 = vsel %vm1391_vm8, %v1416_v63, %v1784_v26  ;;  %v1478_v50 = vmax.f32 %v1474_v11, %v4121_v14  ;;  %v4795_v37 = vld [vmem:[#allocation63_spill] sm:$0xff] }
 0x13a   : > { %v1422_v44 = vmul.f32 0.6931472, %v2073_v57  ;;  %v1442_v23 = vsel %vm1392_vm2, %v1418_v17, %v1785_v18  ;;  %v4771_v21 = vsub.f32 0.0, %v4770_v43  ;;  %v4774_v16 = vsub.f32 %v4772_v56, %v4773_v8  ;;  %v4777_v18 = vld [vmem:[#allocation74_spill] sm:$0xff]  ;;  %v4800_v56 = vld [vmem:[#allocation35_spill] sm:$0xff]  ;;  %v4803_v8 = vld [vmem:[#allocation36_spill] sm:$0xff] }
 0x13b   : > { %v2075_v52 = vpop.eup %2074  ;;  %v1443_v22 = vsel %vm1393_vm11, %v1420_v51, %v1786_v32  ;;  %v4776_v33 = vsub.f32 0.0, %v4775_v31  ;;  %v4778_v38 = vsub.f32 0.0, %v4777_v18  ;;  %v4780_v11 = vsub.f32 0.0, %v4779_v40  ;;  %v4781_v32 = vld [vmem:[#allocation76_spill] sm:$0xff]  ;;  %v4790_v17 = vld [vmem:[#allocation62_spill] sm:$0xff]  ;;  %v4807_v31 = vld [vmem:[#allocation67_spill] sm:$0xff] }
 0x13c   : > { %v1451_v55 = vsel %vm1447_vm7, %v4771_v21, %v1438_v36  ;;  %v1463_v47 = vsel %vm1460_vm10, %v4774_v16, %v1450_v0  ;;  %v2077_v26 = vpop.eup %2076  ;;  %v1424_v30 = vmul.f32 0.6931472, %v2075_v52  ;;  %v1444_v34 = vsel %vm1394_vm9, %v1422_v44, %v1787_v25  ;;  %v4787_v0 = vld [vmem:[#allocation79_spill] sm:$0xff]  ;;  %v4792_v51 = vld [vmem:[#allocation80_spill] sm:$0xff]  ;;  %v4797_v44 = vld [vmem:[#allocation34_spill] sm:$0xff] }
 0x13d   : > { %v1452_v15 = vsel %vm1447_vm7, %v4776_v33, %v1439_v60  ;;  %v1453_v59 = vsel %vm1447_vm7, %v4778_v38, %v1440_v53  ;;  %v1426_v7 = vmul.f32 0.6931472, %v2077_v26  ;;  %v1454_v46 = vsel %vm1447_vm7, %v4780_v11, %v1441_v12  ;;  %v4804_v16 = vld [vmem:[#allocation66_spill] sm:$0xff]  ;;  %v4810_v38 = vld [vmem:[#allocation68_spill] sm:$0xff]  ;;  %v4812_v40 = vld [vmem:[#allocation39_spill] sm:$0xff] }
 0x13e   : > { %v4782_v28 = vsub.f32 0.0, %v4781_v32  ;;  %v1445_v29 = vsel %vm1395_vm0, %v1424_v30, %v1788_v61  ;;  %v4784_v41 = vsub.f32 0.0, %v4783_v62  ;;  %v4786_v25 = vsub.f32 0.0, %v4785_v5  ;;  %v4789_v61 = vld [vmem:[#allocation32_spill] sm:$0xff]  ;;  %v4809_v18 = vld [vmem:[#allocation38_spill] sm:$0xff]  ;;  %v4813_v11 = vld [vmem:[#allocation69_spill] sm:$0xff] }
 0x13f   : > { %v1479_v6 = vmax.f32 %v1477_v58, %v1478_v50  ;;  %v1446_v2 = vsel %vm1396_vm14, %v1426_v7, %v1789_v45  ;;  %v4788_v3 = vsub.f32 0.0, %v4787_v0  ;;  %v4791_v60 = vsub.f32 %v4789_v61, %v4790_v17  ;;  %v4794_v50 = vld [vmem:[#allocation33_spill] sm:$0xff] }
 0x140   : > { %v1455_v20 = vsel %vm1447_vm7, %v4782_v28, %v1442_v23  ;;  %v1456_v63 = vsel %vm1447_vm7, %v4784_v41, %v1443_v22  ;;  %v1457_v36 = vsel %vm1447_vm7, %v4786_v25, %v1444_v34  ;;  %v1480_v57 = vmax.f32 %v1475_v9, %v1476_v4  ;;  %v4798_v23 = vld [vmem:[#allocation64_spill] sm:$0xff]  ;;  %v4806_v22 = vld [vmem:[#allocation37_spill] sm:$0xff] }
 0x141   : > { %v1458_v27 = vsel %vm1447_vm7, %v4788_v3, %v1445_v29  ;;  %v1464_v53 = vsel %vm1460_vm10, %v4791_v60, %v1451_v55  ;;  %v4793_v12 = vsub.f32 0.0, %v4792_v51  ;;  %v4796_v45 = vsub.f32 %v4794_v50, %v4795_v37  ;;  %v4801_v55 = vld [vmem:[#allocation65_spill] sm:$0xff] }
 0x142   : > { %v4799_v43 = vsub.f32 %v4797_v44, %v4798_v23  ;;  %v4802_v9 = vsub.f32 %v4800_v56, %v4801_v55  ;;  %v4805_v26 = vsub.f32 %v4803_v8, %v4804_v16  ;;  %v4808_v33 = vsub.f32 %v4806_v22, %v4807_v31 }
 0x143   : > { %v1459_v58 = vsel %vm1447_vm7, %v4793_v12, %v1446_v2  ;;  %v1465_v52 = vsel %vm1460_vm10, %v4796_v45, %v1452_v15  ;;  %v4219_v34 = vmax.f32 %v1479_v6, %v1480_v57  ;;  %v1525_v29 = vadd.f32 %v1464_v53, %v4066_v35 }
 0x144   : > { %v1466_v21 = vsel %vm1460_vm10, %v4799_v43, %v1453_v59  ;;  %v1467_v4 = vsel %vm1460_vm10, %v4802_v9, %v1454_v46  ;;  %v1468_v30 = vsel %vm1460_vm10, %v4805_v26, %v1455_v20  ;;  %v1469_v15 = vsel %vm1460_vm10, %v4808_v33, %v1456_v63 }
 0x145   : > { %v4811_v59 = vsub.f32 %v4809_v18, %v4810_v38  ;;  %v4814_v46 = vsub.f32 %v4812_v40, %v4813_v11  ;;  %v1472_v28 = vsel %vm1460_vm10, %v1186_v1, %v1459_v58  ;;  %v1524_v20 = vadd.f32 %v1463_v47, %v4063_v42 }
 0x146   : > { %v1482_v62 = vsub.f32 %v4063_v42, %v4219_v34  ;;  %v1483_v41 = vsub.f32 %v4066_v35, %v4219_v34  ;;  %v1484_v63 = vsub.f32 %v4089_v54, %v4219_v34  ;;  %v1485_v5 = vsub.f32 %v4104_v10, %v4219_v34 }
 0x147   : > { %v1470_v7 = vsel %vm1460_vm10, %v4811_v59, %v1457_v36  ;;  %v1471_v32 = vsel %vm1460_vm10, %v4814_v46, %v1458_v27  ;;  %v1486_v39 = vsub.f32 %v4075_v48, %v4219_v34  ;;  %v1526_v1 = vadd.f32 %v1465_v52, %v4089_v54 }
 0x148   : > { %v1527_v47 = vadd.f32 %v1466_v21, %v4104_v10  ;;  %v4243_v25 = vadd.f32 %v1467_v4, %v4075_v48  ;;  %v1492_v42 = vmul.f32 1.442695, %v1482_v62  ;;  %v1494_v36 = vmul.f32 1.442695, %v1483_v41 }
 0x149   : > { %v4246_v35 = vadd.f32 %v1468_v30, %v4078_v19  ;;  %v4249_v6 = vadd.f32 %v1469_v15, %v4092_v13  ;;  %v1487_v2 = vsub.f32 %v4078_v19, %v4219_v34  ;;  %v1496_v0 = vmul.f32 1.442695, %v1484_v63 }
 0x14a   : > { %v1498_v3 = vmul.f32 1.442695, %v1485_v5  ;;  %v4254_v54 = vadd.f32 %v1470_v7, %v4107_v49  ;;  %2078 = vpow2.f32 %v1492_v42  ;;  %v4257_v48 = vadd.f32 %v1471_v32, %v4118_v24 }
 0x14b   : > { %v1488_v10 = vsub.f32 %v4092_v13, %v4219_v34  ;;  %2080 = vpow2.f32 %v1494_v36  ;;  %v1500_v27 = vmul.f32 1.442695, %v1486_v39  ;;  %v4262_v61 = vadd.f32 %v1472_v28, %v4121_v14 }
 0x14c   : > { %2082 = vpow2.f32 %v1496_v0  ;;  %v1534_v19 = vmax.f32 %v1524_v20, %v4243_v25  ;;  %v1535_v17 = vmax.f32 %v1525_v29, %v4246_v35  ;;  %v1536_v60 = vmax.f32 %v1526_v1, %v4249_v6 }
 0x14d   : > { %2084 = vpow2.f32 %v1498_v3  ;;  %v1502_v53 = vmul.f32 1.442695, %v1487_v2  ;;  %v1537_v57 = vmax.f32 %v1527_v47, %v4254_v54  ;;  %v1489_v51 = vsub.f32 %v4107_v49, %v4219_v34 }
 0x14e   : > { %v1538_v13 = vmax.f32 %v1534_v19, %v4257_v48  ;;  %v1539_v12 = vmax.f32 %v1535_v17, %v4262_v61  ;;  %v1490_v58 = vsub.f32 %v4118_v24, %v4219_v34  ;;  %2086 = vpow2.f32 %v1500_v27 }
 0x14f   : > { %v1504_v50 = vmul.f32 1.442695, %v1488_v10  ;;  %v1541_v37 = vmax.f32 %v1536_v60, %v1537_v57  ;;  %2088 = vpow2.f32 %v1502_v53  ;;  %v1506_v49 = vmul.f32 1.442695, %v1489_v51 }
 0x150   : > { %v2079_v45 = vpop.eup %2078  ;;  %v1540_v52 = vmax.f32 %v1538_v13, %v1539_v12  ;;  %v1508_v55 = vmul.f32 1.442695, %v1490_v58  ;;  %v1491_v30 = vsub.f32 %v4121_v14, %v4219_v34 }
 0x151   : > { %v2081_v44 = vpop.eup %2080  ;;  %2090 = vpow2.f32 %v1504_v50 }
 0x152   : > { %v2083_v23 = vpop.eup %2082  ;;  %v1512_v43 = vadd.f32 %v2081_v44, %v2079_v45  ;;  %v4274_v21 = vmax.f32 %v1540_v52, %v1541_v37  ;;  %2092 = vpow2.f32 %v1506_v49  ;;  %v1510_v28 = vmul.f32 1.442695, %v1491_v30 }
 0x153   : > { %v2085_v56 = vpop.eup %2084  ;;  %2094 = vpow2.f32 %v1508_v55 }
 0x154   : > { %v1513_v9 = vadd.f32 %v2083_v23, %v1512_v43  ;;  %v1543_v4 = vsub.f32 %v1524_v20, %v4274_v21  ;;  %v1544_v24 = vsub.f32 %v1525_v29, %v4274_v21  ;;  %v1545_v8 = vsub.f32 %v1526_v1, %v4274_v21  ;;  %v2087_v16 = vpop.eup %2086 }
 0x155   : > { %v1546_v26 = vsub.f32 %v1527_v47, %v4274_v21  ;;  %v1547_v31 = vsub.f32 %v4243_v25, %v4274_v21  ;;  %v2089_v33 = vpop.eup %2088  ;;  %v1548_v7 = vsub.f32 %v4246_v35, %v4274_v21  ;;  %v1549_v14 = vsub.f32 %v4249_v6, %v4274_v21 }
 0x156   : > { %v1514_v22 = vadd.f32 %v2085_v56, %v1513_v9  ;;  %v1553_v15 = vmul.f32 1.442695, %v1543_v4  ;;  %v1555_v18 = vmul.f32 1.442695, %v1544_v24  ;;  %v1557_v38 = vmul.f32 1.442695, %v1545_v8 }
 0x157   : > { %v1559_v40 = vmul.f32 1.442695, %v1546_v26  ;;  %v2091_v11 = vpop.eup %2090  ;;  %v1561_v32 = vmul.f32 1.442695, %v1547_v31  ;;  %v1550_v20 = vsub.f32 %v4254_v54, %v4274_v21  ;;  %v1563_v29 = vmul.f32 1.442695, %v1548_v7 }
 0x158   : > { %v1515_v59 = vadd.f32 %v2087_v16, %v1514_v22  ;;  %2096 = vpow2.f32 %v1553_v15  ;;  %v2093_v62 = vpop.eup %2092  ;;  %v1551_v5 = vsub.f32 %v4257_v48, %v4274_v21  ;;  %v1565_v39 = vmul.f32 1.442695, %v1549_v14 }
 0x159   : > { %2098 = vpow2.f32 %v1555_v18  ;;  %v2095_v63 = vpop.eup %2094  ;;  %v1552_v25 = vsub.f32 %v4262_v61, %v4274_v21  ;;  %v1567_v42 = vmul.f32 1.442695, %v1550_v20 }
 0x15a   : > { %v1516_v46 = vadd.f32 %v2089_v33, %v1515_v59  ;;  %2100 = vpow2.f32 %v1557_v38  ;;  %v1569_v0 = vmul.f32 1.442695, %v1551_v5 }
 0x15b   : > { %2102 = vpow2.f32 %v1559_v40  ;;  %v1571_v48 = vmul.f32 1.442695, %v1552_v25 }
 0x15c   : > { %v1517_v41 = vadd.f32 %v2091_v11, %v1516_v46  ;;  %2104 = vpow2.f32 %v1561_v32 }
 0x15d   : > { %2106 = vpow2.f32 %v1510_v28 }
 0x15e   : > { %v2097_v1 = vpop.eup %2096  ;;  %2108 = vpow2.f32 %v1563_v29  ;;  %v1518_v35 = vadd.f32 %v2093_v62, %v1517_v41 }
 0x15f   : > { %v2099_v47 = vpop.eup %2098  ;;  %2110 = vpow2.f32 %v1565_v39 }
 0x160   : > { %v2101_v36 = vpop.eup %2100  ;;  %v1573_v6 = vadd.f32 %v2099_v47, %v2097_v1  ;;  %2112 = vpow2.f32 %v1567_v42  ;;  %v1519_v27 = vadd.f32 %v2095_v63, %v1518_v35 }
 0x161   : > { %v2103_v2 = vpop.eup %2102  ;;  %2114 = vpow2.f32 %v1569_v0 }
 0x162   : > { %v1574_v3 = vadd.f32 %v2101_v36, %v1573_v6  ;;  %v2105_v54 = vpop.eup %2104  ;;  %2116 = vpow2.f32 %v1571_v48 }
 0x163   : > { %v2107_v10 = vpop.eup %2106 }
 0x164   : > { %v1575_v19 = vadd.f32 %v2103_v2, %v1574_v3  ;;  %v2109_v17 = vpop.eup %2108  ;;  %v1520_v53 = vadd.f32 %v2107_v10, %v1519_v27 }
 0x165   : > { %v2111_v61 = vpop.eup %2110 }
 0x166   : > { %v1576_v60 = vadd.f32 %v2105_v54, %v1575_v19  ;;  %v2113_v51 = vpop.eup %2112  ;;  %2118 = vlog2.f32 %v1520_v53 }
 0x167   : > { %v2115_v12 = vpop.eup %2114 }
 0x168   : > { %v1577_v57 = vadd.f32 %v2109_v17, %v1576_v60  ;;  %v2117_v50 = vpop.eup %2116 }
 0x16a   : > { %v1578_v13 = vadd.f32 %v2111_v61, %v1577_v57 }
 0x16c   : > { %v1579_v58 = vadd.f32 %v2113_v51, %v1578_v13  ;;  %v2119_v52 = vpop.eup %2118 }
 0x16d   : > { %v1522_v44 = vmul.f32 0.6931472, %v2119_v52 }
 0x16e   : > { %v1580_v37 = vadd.f32 %v2115_v12, %v1579_v58 }
 0x16f   : > { %v1523_v43 = vadd.f32 %v1522_v44, %v4219_v34 }
 0x170   : > { %v1581_v45 = vadd.f32 %v2117_v50, %v1580_v37 }
 0x172   : > { %2120 = vlog2.f32 %v1581_v45 }
 0x178   : > { %v2121_v23 = vpop.eup %2120 }
 0x179   : > { %v1583_v56 = vmul.f32 0.6931472, %v2121_v23 }
 0x17b   : > { %v1584_v49 = vadd.f32 %v1583_v56, %v4274_v21 }
 0x17d   : > { %v1585_v55 = vsub.f32 %v1523_v43, %v1584_v49 }
 0x17f   : > { %1586 = vst [vmem:[%s365_s11] sm:$0xff] %v1585_v55 }
 0x180   : > { %2270 = shalt.err (!%p2267_p13)
}
 0x181   : > { %1807 = dma.vmem_to_hbm [thread:$0]  (%p2417_p9), %s1602_s12, 128, %s1604_s13, %s1588_s18  }
 0x182 PF: > { %s4815_s17 = sld [smem:[#allocation15_spill]]  ;;  %p1823_p0 = pnand %p1761_p12, %p2424_p11 }
 0x183   : > { %s4817_s20 = sld [smem:[#allocation17_spill]] }
 0x184   : > { %p1824_p1 = pneg %p1823_p0 }
 0x188   : > { %s1615_s23 = sand.u32 1, %s4815_s17  }
 0x189   : > { %s1616_s30 = scalar_lea.sflag [#allocation4], %s1615_s23 }
 0x18a   : > { %2308 = dma.done.wait (%p1824_p1), %s1616_s30, 128  }
 0x18b   : > { %2310 = vsyncadd (%p1824_p1), %s1616_s30, 4294967168  ;;  %s26_s20 = sadd.s32 1, %s4817_s20   ;;  %s4818_s5 = sld [smem:[#allocation16_spill]] }
 0x18c   : > { %p23_p2 = scmp.ge.s32.totalorder %s26_s20, 4   ;;  %s4819_s17 = sld [smem:[#allocation19_spill]] }
 0x18d   : > { %s4820_s28 = sld [smem:[#allocation18_spill]]  ;;  %s4821_s15 = smov %s2317_s16 }
 0x18e   : > { %s4823_s18 = smov %s2329_s19 }
 0x18f   :  { %25 = sbr.rel (!%p23_p2) target bundleno = 13 (0xd), region = 118 }
 0x191   : > { %s4822_s16 = smov %s4818_s5 }
 0x193   : > { %s4824_s19 = smov %s4820_s28 }
 0x194   :  { %1622 = vsyncpa [#allocation3], 1 }
 0x195   :  { %1624 = vsyncpa [#allocation3 + $0x1], 1 }
 0x196   :  { %1625 = vsyncpa [#allocation6], 1 }
 0x197   :  { %1627 = vsyncpa [#allocation6 + $0x1], 1 }
 0x198   :  { %1628 = vsyncpa [#allocation9], 1 }
 0x199   :  { %1630 = vsyncpa [#allocation9 + $0x1], 1 }
 0x19a   :  { %1631 = vsyncpa [#allocation4], 1 }
 0x19b   :  { %1633 = vsyncpa [#allocation4 + $0x1], 1 }

</bundles_post_ra>
